<compile_context>
chip_gen: v7x
topology: tpu7x:2x2x1
jax: 0.10.0
libtpu: 0.0.40
codegen_flags: <defaults>
</compile_context>

<pallas_src>
import functools

import jax
import jax.numpy as jnp
from jax import lax
from jax.experimental import pallas as pl
from jax.experimental.pallas import tpu as pltpu


# ------------------------------ helpers -------------------------------------
def _silu(x):
    # SiLU = x * sigmoid(x).  exp routes to the EUP; pl.reciprocal avoids a
    # multi-op VALU divide sequence.
    return x * pl.reciprocal(1.0 + jnp.exp(-x), approx=False)


def _choose_tm(M):
    """Adaptive M tile: no padding, >=2 grid steps when M is large enough."""
    if M % 128 == 0 and M >= 256:
        return 128
    if M % 64 == 0 and M >= 128:
        return 64
    return M  # full-M single block (full array dim is always a legal block dim)


# ----------------------- fused GEMM + bias + SiLU kernel ---------------------
def _gemm_bias_act_kernel(x_ref, w_ref, b_ref, o_ref, *, apply_silu):
    # x_ref: (TM, K), w_ref: (K, N), b_ref: (1, N), o_ref: (TM, N)
    acc = jnp.dot(x_ref[...], w_ref[...], preferred_element_type=jnp.float32)
    acc = acc + b_ref[...]
    if apply_silu:
        acc = _silu(acc)
    o_ref[...] = acc.astype(o_ref.dtype)


def fused_gemm_bias_act(x, w, b2d, apply_silu):
    """act(x @ w + b), fused on TPU.  x:(M,K), w:(K,N), b2d:(1,N).  No padding,
    no slicing: K and N are full-dim blocks, M is tiled adaptively."""
    M, K = x.shape
    K2, N = w.shape
    assert K == K2 and b2d.shape == (1, N)
    TM = _choose_tm(M)
    grid = (M // TM,)
    return pl.pallas_call(
        functools.partial(_gemm_bias_act_kernel, apply_silu=apply_silu),
        out_shape=jax.ShapeDtypeStruct((M, N), jnp.float32),
        grid=grid,
        in_specs=[
            pl.BlockSpec((TM, K), lambda i: (i, 0)),
            pl.BlockSpec((K, N), lambda i: (0, 0)),
            pl.BlockSpec((1, N), lambda i: (0, 0)),
        ],
        out_specs=pl.BlockSpec((TM, N), lambda i: (i, 0)),
        compiler_params=pltpu.CompilerParams(
            dimension_semantics=("parallel",)),
    )(x, w, b2d)


# --------------------------- fused MLP head kernel ---------------------------
def _mlp_head_kernel(*refs, n_layers):
    # refs = (x_ref, w1, b1, w2, b2, ..., o_ref); all full VMEM blocks.
    x_ref, o_ref = refs[0], refs[-1]
    h = x_ref[...]
    for li in range(n_layers):
        w_ref = refs[1 + 2 * li]
        b_ref = refs[2 + 2 * li]
        h = jnp.dot(h, w_ref[...], preferred_element_type=jnp.float32) + b_ref[...]
        if li != n_layers - 1:          # SiLU after hidden linears only
            h = _silu(h)
    o_ref[...] = h.astype(o_ref.dtype)


def mlp_head_pallas(x, lin_prep):
    """Entire Linear->SiLU->Linear->SiLU->Linear head in ONE pallas_call.
    All weights (<1 MiB total here) live as full VMEM blocks."""
    M = x.shape[0]
    n_layers = len(lin_prep)
    args = [x]
    in_specs = [pl.BlockSpec(x.shape, lambda i: (0, 0))]
    for (w, b) in lin_prep:
        args.extend([w, b])
        in_specs.append(pl.BlockSpec(w.shape, lambda i: (0, 0)))
        in_specs.append(pl.BlockSpec(b.shape, lambda i: (0, 0)))
    n_out = lin_prep[-1][0].shape[1]
    return pl.pallas_call(
        functools.partial(_mlp_head_kernel, n_layers=n_layers),
        out_shape=jax.ShapeDtypeStruct((M, n_out), jnp.float32),
        grid=(1,),
        in_specs=in_specs,
        out_specs=pl.BlockSpec((M, n_out), lambda i: (0, 0)),
        compiler_params=pltpu.CompilerParams(
            dimension_semantics=("arbitrary",)),
    )(*args)


# ------------------------------ conv via im2col ------------------------------
def _im2col_nhwc(x, k, stride, padding):
    """x: (N, H, W, C) -> cols (N*Ho*Wo, k*k*C) with (kh, kw, C) column order."""
    N, H, W, C = x.shape
    Ho = (H + 2 * padding - k) // stride + 1
    Wo = (W + 2 * padding - k) // stride + 1
    xp = jnp.pad(x, ((0, 0), (padding, padding), (padding, padding), (0, 0)))
    taps = []
    for ki in range(k):
        for kj in range(k):
            taps.append(
                xp[:, ki:ki + stride * Ho:stride, kj:kj + stride * Wo:stride, :])
    p = jnp.stack(taps, axis=3)                       # (N, Ho, Wo, k*k, C)
    return p.reshape(N * Ho * Wo, k * k * C), Ho, Wo  # row-major -> zero-copy


def conv2d_nhwc_pallas(x, w2d, b2d, k, stride, padding, apply_silu):
    """Conv2d with PyTorch semantics, NHWC in/out.  w2d pre-reshaped to
    (kh*kw*C, O), b2d to (1, O)."""
    N = x.shape[0]
    O = w2d.shape[1]
    cols, Ho, Wo = _im2col_nhwc(x, k, stride, padding)
    y = fused_gemm_bias_act(cols, w2d, b2d, apply_silu)   # (N*Ho*Wo, O)
    return y.reshape(N, Ho, Wo, O)                        # stay NHWC (no transpose)


# ------------------------------ params ---------------------------------------
def init_params(key, image_dim, output_size,
                cnn_layers=((3, 16), (16, 32), (32, 64), (64, 128)),
                hidden_linear_layers=(128, 64), kernel_size=3):
    """PyTorch-layout parameters: conv (O, C, kh, kw), linear (out, in)."""
    params = {"conv": [], "lin": []}
    keys = jax.random.split(key, 32)
    ki = 0
    for (cin, cout) in cnn_layers:
        w = 0.05 * jax.random.normal(keys[ki], (cout, cin, kernel_size, kernel_size),
                                     dtype=jnp.float32); ki += 1
        b = 0.05 * jax.random.normal(keys[ki], (cout,), dtype=jnp.float32); ki += 1
        params["conv"].append((w, b))
    a = cnn_layers[-1][1]
    bdiv = cnn_layers[0][1]
    flattened = a * (image_dim // bdiv) * (image_dim // bdiv)
    last = flattened
    for size in list(hidden_linear_layers) + [output_size]:
        w = 0.05 * jax.random.normal(keys[ki], (size, last), dtype=jnp.float32); ki += 1
        b = 0.05 * jax.random.normal(keys[ki], (size,), dtype=jnp.float32); ki += 1
        params["lin"].append((w, b))
        last = size
    return params


def prepare_params(params, image_dim, stride=2, padding=1):
    """One-time layout prep so the per-forward path has zero pads/transposes:
      * conv weight (O,C,kh,kw) -> (kh*kw*C, O)  (matches NHWC im2col cols)
      * first linear weight columns permuted from (C,H,W)- to (H,W,C)-major
        so the NHWC flatten needs no data movement
      * all linear weights pre-transposed to (K, N); biases reshaped to (1, N)
    """
    conv_prep = []
    H = image_dim
    for (w, b) in params["conv"]:
        O, C, kh, kw = w.shape
        w2d = jnp.transpose(w, (2, 3, 1, 0)).reshape(kh * kw * C, O)
        conv_prep.append((w2d, b.reshape(1, O)))
        H = (H + 2 * padding - kh) // stride + 1
    Hf = H
    C_last = params["conv"][-1][0].shape[0]

    lin_prep = []
    for li, (w, b) in enumerate(params["lin"]):
        out_dim, in_dim = w.shape
        if li == 0:
            w = (w.reshape(out_dim, C_last, Hf, Hf)
                   .transpose(0, 2, 3, 1)
                   .reshape(out_dim, in_dim))
        lin_prep.append((w.T, b.reshape(1, out_dim)))     # (K, N), (1, N)
    return {"conv": conv_prep, "lin": lin_prep}


# ------------------------------ full forward ---------------------------------
def image_regressor_forward(prep, x_nchw, stride=2, padding=1, kernel_size=3):
    """Pallas-backed forward.  x_nchw: (N, 3, image_dim, image_dim) float32."""
    x = jnp.transpose(x_nchw, (0, 2, 3, 1))       # NCHW -> NHWC, once
    n_conv = len(prep["conv"])
    for i, (w2d, b2d) in enumerate(prep["conv"]):
        apply_silu = (i != n_conv - 1)            # no activation after last conv
        x = conv2d_nhwc_pallas(x, w2d, b2d, kernel_size, stride, padding, apply_silu)
        # Dropout: identity (eval mode)
    n = x.shape[0]
    x = x.reshape(n, -1)                          # NHWC flatten (zero-copy)
    return mlp_head_pallas(x, prep["lin"])        # fused Linear/SiLU/.../Linear


# --------------------------- reference (plain JAX) ----------------------------
def _reference_forward(params, x, stride=2, padding=1):
    def silu(v):
        return v * jax.nn.sigmoid(v)
    n_conv = len(params["conv"])
    for i, (w, b) in enumerate(params["conv"]):
        x = lax.conv_general_dilated(
            x, w, window_strides=(stride, stride),
            padding=((padding, padding), (padding, padding)),
            dimension_numbers=("NCHW", "OIHW", "NCHW"))
        x = x + b[None, :, None, None]
        if i != n_conv - 1:
            x = silu(x)
    x = x.reshape(x.shape[0], -1)                 # PyTorch flatten (NCHW order)
    n_lin = len(params["lin"])
    for i, (w, b) in enumerate(params["lin"]):
        x = x @ w.T + b
        if i != n_lin - 1:
            x = silu(x)
    return x


if __name__ == "__main__":
    image_dim = 32
    output_size = 4
    batch = 2

    key = jax.random.PRNGKey(0)
    pkey, xkey = jax.random.split(key)
    params = init_params(pkey, image_dim, output_size)
    prep = prepare_params(params, image_dim)
    x = jax.random.normal(xkey, (batch, 3, image_dim, image_dim), dtype=jnp.float32)

    fwd = jax.jit(image_regressor_forward)
    out = jax.block_until_ready(fwd(prep, x))

    ref = jax.block_until_ready(_reference_forward(params, x))
    assert out.shape == (batch, output_size), out.shape
    assert jnp.allclose(out, ref, rtol=1e-4, atol=1e-4), (
        float(jnp.max(jnp.abs(out - ref))))

    print("KERNEL_OK")
</pallas_src>

<mosaic_0001>
module attributes {stable_mosaic.version = 11 : i64} {
  func.func @_gemm_bias_act_kernel(%arg0: i32, %arg1: memref<128x27xf32, #tpu.memory_space<vmem>>, %arg2: memref<27x16xf32, #tpu.memory_space<vmem>>, %arg3: memref<1x16xf32, #tpu.memory_space<vmem>>, %arg4: memref<128x16xf32, #tpu.memory_space<vmem>>) attributes {dimension_semantics = [#tpu.dimension_semantics<parallel>], iteration_bounds = array<i64: 4>, scalar_prefetch = 0 : i64, scratch_operands = 0 : i64, tpu.core_type = #tpu.core_type<tc>, window_params = [{transform_indices = @transform_0, window_bounds = array<i64: 128, 27>}, {pipeline_mode = #tpu.pipeline_mode<synchronous>, transform_indices = @transform_1, window_bounds = array<i64: 27, 16>}, {pipeline_mode = #tpu.pipeline_mode<synchronous>, transform_indices = @transform_2, window_bounds = array<i64: 1, 16>}, {transform_indices = @transform_3, window_bounds = array<i64: 128, 16>}]} {
    %c0 = arith.constant 0 : index
    %c0_0 = arith.constant 0 : index
    %0 = vector.load %arg1[%c0, %c0_0] : memref<128x27xf32, #tpu.memory_space<vmem>>, vector<128x27xf32>
    %c0_1 = arith.constant 0 : index
    %c0_2 = arith.constant 0 : index
    %1 = vector.load %arg2[%c0_1, %c0_2] : memref<27x16xf32, #tpu.memory_space<vmem>>, vector<27x16xf32>
    %cst = arith.constant dense<0.000000e+00> : vector<128x16xf32>
    %2 = tpu.matmul %0, %1, %cst {dimension_numbers = #tpu.dot_dimension_numbers<[1], [0], [0], [1], [0, 0, 1, 1], [], []>} : vector<128x27xf32>, vector<27x16xf32>, vector<128x16xf32> -> vector<128x16xf32>
    %c0_3 = arith.constant 0 : index
    %c0_4 = arith.constant 0 : index
    %3 = vector.load %arg3[%c0_3, %c0_4] : memref<1x16xf32, #tpu.memory_space<vmem>>, vector<1x16xf32>
    %4 = vector.broadcast %3 : vector<1x16xf32> to vector<128x16xf32>
    %5 = arith.addf %2, %4 : vector<128x16xf32>
    %cst_5 = arith.constant 0.000000e+00 : f32
    %6 = vector.broadcast %cst_5 : f32 to vector<128x16xf32>
    %7 = arith.subf %6, %5 : vector<128x16xf32>
    %8 = math.exp %7 : vector<128x16xf32>
    %cst_6 = arith.constant 1.000000e+00 : f32
    %9 = vector.broadcast %cst_6 : f32 to vector<128x16xf32>
    %10 = arith.addf %9, %8 : vector<128x16xf32>
    %11 = tpu.reciprocal %10 : vector<128x16xf32> -> vector<128x16xf32>
    %12 = arith.mulf %5, %11 : vector<128x16xf32>
    %c0_7 = arith.constant 0 : index
    %c0_8 = arith.constant 0 : index
    %13 = vector.load %arg4[%c0_7, %c0_8] : memref<128x16xf32, #tpu.memory_space<vmem>>, vector<128x16xf32>
    tpu.vector_store %arg4[%c0_7, %c0_8], %12 {strides = array<i32>} : memref<128x16xf32, #tpu.memory_space<vmem>>, vector<128x16xf32>,
    return
  }
  func.func @transform_0(%arg0: i32) -> (i32, i32) {
    %c0_i32 = arith.constant 0 : i32
    %c0_i32_0 = arith.constant 0 : i32
    return %arg0, %c0_i32 : i32, i32
  }
  func.func @transform_1(%arg0: i32) -> (i32, i32) {
    %c0_i32 = arith.constant 0 : i32
    %c0_i32_0 = arith.constant 0 : i32
    %c0_i32_1 = arith.constant 0 : i32
    return %c0_i32, %c0_i32_0 : i32, i32
  }
  func.func @transform_2(%arg0: i32) -> (i32, i32) {
    %c0_i32 = arith.constant 0 : i32
    %c0_i32_0 = arith.constant 0 : i32
    %c0_i32_1 = arith.constant 0 : i32
    return %c0_i32, %c0_i32_0 : i32, i32
  }
  func.func @transform_3(%arg0: i32) -> (i32, i32) {
    %c0_i32 = arith.constant 0 : i32
    %c0_i32_0 = arith.constant 0 : i32
    return %arg0, %c0_i32 : i32, i32
  }
}

module attributes {stable_mosaic.version = 11 : i64} {
  func.func @_gemm_bias_act_kernel(%arg0: i32, %arg1: memref<64x144xf32, #tpu.memory_space<vmem>>, %arg2: memref<144x32xf32, #tpu.memory_space<vmem>>, %arg3: memref<1x32xf32, #tpu.memory_space<vmem>>, %arg4: memref<64x32xf32, #tpu.memory_space<vmem>>) attributes {dimension_semantics = [#tpu.dimension_semantics<parallel>], iteration_bounds = array<i64: 2>, scalar_prefetch = 0 : i64, scratch_operands = 0 : i64, tpu.core_type = #tpu.core_type<tc>, window_params = [{transform_indices = @transform_0, window_bounds = array<i64: 64, 144>}, {pipeline_mode = #tpu.pipeline_mode<synchronous>, transform_indices = @transform_1, window_bounds = array<i64: 144, 32>}, {pipeline_mode = #tpu.pipeline_mode<synchronous>, transform_indices = @transform_2, window_bounds = array<i64: 1, 32>}, {transform_indices = @transform_3, window_bounds = array<i64: 64, 32>}]} {
    %c0 = arith.constant 0 : index
    %c0_0 = arith.constant 0 : index
    %0 = vector.load %arg1[%c0, %c0_0] : memref<64x144xf32, #tpu.memory_space<vmem>>, vector<64x144xf32>
    %c0_1 = arith.constant 0 : index
    %c0_2 = arith.constant 0 : index
    %1 = vector.load %arg2[%c0_1, %c0_2] : memref<144x32xf32, #tpu.memory_space<vmem>>, vector<144x32xf32>
    %cst = arith.constant dense<0.000000e+00> : vector<64x32xf32>
    %2 = tpu.matmul %0, %1, %cst {dimension_numbers = #tpu.dot_dimension_numbers<[1], [0], [0], [1], [0, 0, 1, 1], [], []>} : vector<64x144xf32>, vector<144x32xf32>, vector<64x32xf32> -> vector<64x32xf32>
    %c0_3 = arith.constant 0 : index
    %c0_4 = arith.constant 0 : index
    %3 = vector.load %arg3[%c0_3, %c0_4] : memref<1x32xf32, #tpu.memory_space<vmem>>, vector<1x32xf32>
    %4 = vector.broadcast %3 : vector<1x32xf32> to vector<64x32xf32>
    %5 = arith.addf %2, %4 : vector<64x32xf32>
    %cst_5 = arith.constant 0.000000e+00 : f32
    %6 = vector.broadcast %cst_5 : f32 to vector<64x32xf32>
    %7 = arith.subf %6, %5 : vector<64x32xf32>
    %8 = math.exp %7 : vector<64x32xf32>
    %cst_6 = arith.constant 1.000000e+00 : f32
    %9 = vector.broadcast %cst_6 : f32 to vector<64x32xf32>
    %10 = arith.addf %9, %8 : vector<64x32xf32>
    %11 = tpu.reciprocal %10 : vector<64x32xf32> -> vector<64x32xf32>
    %12 = arith.mulf %5, %11 : vector<64x32xf32>
    %c0_7 = arith.constant 0 : index
    %c0_8 = arith.constant 0 : index
    %13 = vector.load %arg4[%c0_7, %c0_8] : memref<64x32xf32, #tpu.memory_space<vmem>>, vector<64x32xf32>
    tpu.vector_store %arg4[%c0_7, %c0_8], %12 {strides = array<i32>} : memref<64x32xf32, #tpu.memory_space<vmem>>, vector<64x32xf32>,
    return
  }
  func.func @transform_0(%arg0: i32) -> (i32, i32) {
    %c0_i32 = arith.constant 0 : i32
    %c0_i32_0 = arith.constant 0 : i32
    return %arg0, %c0_i32 : i32, i32
  }
  func.func @transform_1(%arg0: i32) -> (i32, i32) {
    %c0_i32 = arith.constant 0 : i32
    %c0_i32_0 = arith.constant 0 : i32
    %c0_i32_1 = arith.constant 0 : i32
    return %c0_i32, %c0_i32_0 : i32, i32
  }
  func.func @transform_2(%arg0: i32) -> (i32, i32) {
    %c0_i32 = arith.constant 0 : i32
    %c0_i32_0 = arith.constant 0 : i32
    %c0_i32_1 = arith.constant 0 : i32
    return %c0_i32, %c0_i32_0 : i32, i32
  }
  func.func @transform_3(%arg0: i32) -> (i32, i32) {
    %c0_i32 = arith.constant 0 : i32
    %c0_i32_0 = arith.constant 0 : i32
    return %arg0, %c0_i32 : i32, i32
  }
}

module attributes {stable_mosaic.version = 11 : i64} {
  func.func @_gemm_bias_act_kernel(%arg0: i32, %arg1: memref<32x288xf32, #tpu.memory_space<vmem>>, %arg2: memref<288x64xf32, #tpu.memory_space<vmem>>, %arg3: memref<1x64xf32, #tpu.memory_space<vmem>>, %arg4: memref<32x64xf32, #tpu.memory_space<vmem>>) attributes {dimension_semantics = [#tpu.dimension_semantics<parallel>], iteration_bounds = array<i64: 1>, scalar_prefetch = 0 : i64, scratch_operands = 0 : i64, tpu.core_type = #tpu.core_type<tc>, window_params = [{transform_indices = @transform_0, window_bounds = array<i64: 32, 288>}, {pipeline_mode = #tpu.pipeline_mode<synchronous>, transform_indices = @transform_1, window_bounds = array<i64: 288, 64>}, {pipeline_mode = #tpu.pipeline_mode<synchronous>, transform_indices = @transform_2, window_bounds = array<i64: 1, 64>}, {transform_indices = @transform_3, window_bounds = array<i64: 32, 64>}]} {
    %c0 = arith.constant 0 : index
    %c0_0 = arith.constant 0 : index
    %0 = vector.load %arg1[%c0, %c0_0] : memref<32x288xf32, #tpu.memory_space<vmem>>, vector<32x288xf32>
    %c0_1 = arith.constant 0 : index
    %c0_2 = arith.constant 0 : index
    %1 = vector.load %arg2[%c0_1, %c0_2] : memref<288x64xf32, #tpu.memory_space<vmem>>, vector<288x64xf32>
    %cst = arith.constant dense<0.000000e+00> : vector<32x64xf32>
    %2 = tpu.matmul %0, %1, %cst {dimension_numbers = #tpu.dot_dimension_numbers<[1], [0], [0], [1], [0, 0, 1, 1], [], []>} : vector<32x288xf32>, vector<288x64xf32>, vector<32x64xf32> -> vector<32x64xf32>
    %c0_3 = arith.constant 0 : index
    %c0_4 = arith.constant 0 : index
    %3 = vector.load %arg3[%c0_3, %c0_4] : memref<1x64xf32, #tpu.memory_space<vmem>>, vector<1x64xf32>
    %4 = vector.broadcast %3 : vector<1x64xf32> to vector<32x64xf32>
    %5 = arith.addf %2, %4 : vector<32x64xf32>
    %cst_5 = arith.constant 0.000000e+00 : f32
    %6 = vector.broadcast %cst_5 : f32 to vector<32x64xf32>
    %7 = arith.subf %6, %5 : vector<32x64xf32>
    %8 = math.exp %7 : vector<32x64xf32>
    %cst_6 = arith.constant 1.000000e+00 : f32
    %9 = vector.broadcast %cst_6 : f32 to vector<32x64xf32>
    %10 = arith.addf %9, %8 : vector<32x64xf32>
    %11 = tpu.reciprocal %10 : vector<32x64xf32> -> vector<32x64xf32>
    %12 = arith.mulf %5, %11 : vector<32x64xf32>
    %c0_7 = arith.constant 0 : index
    %c0_8 = arith.constant 0 : index
    %13 = vector.load %arg4[%c0_7, %c0_8] : memref<32x64xf32, #tpu.memory_space<vmem>>, vector<32x64xf32>
    tpu.vector_store %arg4[%c0_7, %c0_8], %12 {strides = array<i32>} : memref<32x64xf32, #tpu.memory_space<vmem>>, vector<32x64xf32>,
    return
  }
  func.func @transform_0(%arg0: i32) -> (i32, i32) {
    %c0_i32 = arith.constant 0 : i32
    %c0_i32_0 = arith.constant 0 : i32
    return %arg0, %c0_i32 : i32, i32
  }
  func.func @transform_1(%arg0: i32) -> (i32, i32) {
    %c0_i32 = arith.constant 0 : i32
    %c0_i32_0 = arith.constant 0 : i32
    %c0_i32_1 = arith.constant 0 : i32
    return %c0_i32, %c0_i32_0 : i32, i32
  }
  func.func @transform_2(%arg0: i32) -> (i32, i32) {
    %c0_i32 = arith.constant 0 : i32
    %c0_i32_0 = arith.constant 0 : i32
    %c0_i32_1 = arith.constant 0 : i32
    return %c0_i32, %c0_i32_0 : i32, i32
  }
  func.func @transform_3(%arg0: i32) -> (i32, i32) {
    %c0_i32 = arith.constant 0 : i32
    %c0_i32_0 = arith.constant 0 : i32
    return %arg0, %c0_i32 : i32, i32
  }
}

module attributes {stable_mosaic.version = 11 : i64} {
  func.func @_gemm_bias_act_kernel(%arg0: i32, %arg1: memref<8x576xf32, #tpu.memory_space<vmem>>, %arg2: memref<576x128xf32, #tpu.memory_space<vmem>>, %arg3: memref<1x128xf32, #tpu.memory_space<vmem>>, %arg4: memref<8x128xf32, #tpu.memory_space<vmem>>) attributes {dimension_semantics = [#tpu.dimension_semantics<parallel>], iteration_bounds = array<i64: 1>, scalar_prefetch = 0 : i64, scratch_operands = 0 : i64, tpu.core_type = #tpu.core_type<tc>, window_params = [{transform_indices = @transform_0, window_bounds = array<i64: 8, 576>}, {pipeline_mode = #tpu.pipeline_mode<synchronous>, transform_indices = @transform_1, window_bounds = array<i64: 576, 128>}, {pipeline_mode = #tpu.pipeline_mode<synchronous>, transform_indices = @transform_2, window_bounds = array<i64: 1, 128>}, {transform_indices = @transform_3, window_bounds = array<i64: 8, 128>}]} {
    %c0 = arith.constant 0 : index
    %c0_0 = arith.constant 0 : index
    %0 = vector.load %arg1[%c0, %c0_0] : memref<8x576xf32, #tpu.memory_space<vmem>>, vector<8x576xf32>
    %c0_1 = arith.constant 0 : index
    %c0_2 = arith.constant 0 : index
    %1 = vector.load %arg2[%c0_1, %c0_2] : memref<576x128xf32, #tpu.memory_space<vmem>>, vector<576x128xf32>
    %cst = arith.constant dense<0.000000e+00> : vector<8x128xf32>
    %2 = tpu.matmul %0, %1, %cst {dimension_numbers = #tpu.dot_dimension_numbers<[1], [0], [0], [1], [0, 0, 1, 1], [], []>} : vector<8x576xf32>, vector<576x128xf32>, vector<8x128xf32> -> vector<8x128xf32>
    %c0_3 = arith.constant 0 : index
    %c0_4 = arith.constant 0 : index
    %3 = vector.load %arg3[%c0_3, %c0_4] : memref<1x128xf32, #tpu.memory_space<vmem>>, vector<1x128xf32>
    %4 = vector.broadcast %3 : vector<1x128xf32> to vector<8x128xf32>
    %5 = arith.addf %2, %4 : vector<8x128xf32>
    %c0_5 = arith.constant 0 : index
    %c0_6 = arith.constant 0 : index
    %6 = vector.load %arg4[%c0_5, %c0_6] : memref<8x128xf32, #tpu.memory_space<vmem>>, vector<8x128xf32>
    tpu.vector_store %arg4[%c0_5, %c0_6], %5 {strides = array<i32>} : memref<8x128xf32, #tpu.memory_space<vmem>>, vector<8x128xf32>,
    return
  }
  func.func @transform_0(%arg0: i32) -> (i32, i32) {
    %c0_i32 = arith.constant 0 : i32
    %c0_i32_0 = arith.constant 0 : i32
    return %arg0, %c0_i32 : i32, i32
  }
  func.func @transform_1(%arg0: i32) -> (i32, i32) {
    %c0_i32 = arith.constant 0 : i32
    %c0_i32_0 = arith.constant 0 : i32
    %c0_i32_1 = arith.constant 0 : i32
    return %c0_i32, %c0_i32_0 : i32, i32
  }
  func.func @transform_2(%arg0: i32) -> (i32, i32) {
    %c0_i32 = arith.constant 0 : i32
    %c0_i32_0 = arith.constant 0 : i32
    %c0_i32_1 = arith.constant 0 : i32
    return %c0_i32, %c0_i32_0 : i32, i32
  }
  func.func @transform_3(%arg0: i32) -> (i32, i32) {
    %c0_i32 = arith.constant 0 : i32
    %c0_i32_0 = arith.constant 0 : i32
    return %arg0, %c0_i32 : i32, i32
  }
}

module attributes {stable_mosaic.version = 11 : i64} {
  func.func @_mlp_head_kernel(%arg0: i32, %arg1: memref<2x512xf32, #tpu.memory_space<vmem>>, %arg2: memref<512x128xf32, #tpu.memory_space<vmem>>, %arg3: memref<1x128xf32, #tpu.memory_space<vmem>>, %arg4: memref<128x64xf32, #tpu.memory_space<vmem>>, %arg5: memref<1x64xf32, #tpu.memory_space<vmem>>, %arg6: memref<64x4xf32, #tpu.memory_space<vmem>>, %arg7: memref<1x4xf32, #tpu.memory_space<vmem>>, %arg8: memref<2x4xf32, #tpu.memory_space<vmem>>) attributes {dimension_semantics = [#tpu.dimension_semantics<arbitrary>], iteration_bounds = array<i64: 1>, scalar_prefetch = 0 : i64, scratch_operands = 0 : i64, tpu.core_type = #tpu.core_type<tc>, window_params = [{pipeline_mode = #tpu.pipeline_mode<synchronous>, transform_indices = @transform_0, window_bounds = array<i64: 2, 512>}, {pipeline_mode = #tpu.pipeline_mode<synchronous>, transform_indices = @transform_1, window_bounds = array<i64: 512, 128>}, {pipeline_mode = #tpu.pipeline_mode<synchronous>, transform_indices = @transform_2, window_bounds = array<i64: 1, 128>}, {pipeline_mode = #tpu.pipeline_mode<synchronous>, transform_indices = @transform_3, window_bounds = array<i64: 128, 64>}, {pipeline_mode = #tpu.pipeline_mode<synchronous>, transform_indices = @transform_4, window_bounds = array<i64: 1, 64>}, {pipeline_mode = #tpu.pipeline_mode<synchronous>, transform_indices = @transform_5, window_bounds = array<i64: 64, 4>}, {pipeline_mode = #tpu.pipeline_mode<synchronous>, transform_indices = @transform_6, window_bounds = array<i64: 1, 4>}, {pipeline_mode = #tpu.pipeline_mode<synchronous>, transform_indices = @transform_7, window_bounds = array<i64: 2, 4>}]} {
    %c0 = arith.constant 0 : index
    %c0_0 = arith.constant 0 : index
    %0 = vector.load %arg1[%c0, %c0_0] : memref<2x512xf32, #tpu.memory_space<vmem>>, vector<2x512xf32>
    %c0_1 = arith.constant 0 : index
    %c0_2 = arith.constant 0 : index
    %1 = vector.load %arg2[%c0_1, %c0_2] : memref<512x128xf32, #tpu.memory_space<vmem>>, vector<512x128xf32>
    %cst = arith.constant dense<0.000000e+00> : vector<2x128xf32>
    %2 = tpu.matmul %0, %1, %cst {dimension_numbers = #tpu.dot_dimension_numbers<[1], [0], [0], [1], [0, 0, 1, 1], [], []>} : vector<2x512xf32>, vector<512x128xf32>, vector<2x128xf32> -> vector<2x128xf32>
    %c0_3 = arith.constant 0 : index
    %c0_4 = arith.constant 0 : index
    %3 = vector.load %arg3[%c0_3, %c0_4] : memref<1x128xf32, #tpu.memory_space<vmem>>, vector<1x128xf32>
    %4 = vector.broadcast %3 : vector<1x128xf32> to vector<2x128xf32>
    %5 = arith.addf %2, %4 : vector<2x128xf32>
    %cst_5 = arith.constant 0.000000e+00 : f32
    %6 = vector.broadcast %cst_5 : f32 to vector<2x128xf32>
    %7 = arith.subf %6, %5 : vector<2x128xf32>
    %8 = math.exp %7 : vector<2x128xf32>
    %cst_6 = arith.constant 1.000000e+00 : f32
    %9 = vector.broadcast %cst_6 : f32 to vector<2x128xf32>
    %10 = arith.addf %9, %8 : vector<2x128xf32>
    %11 = tpu.reciprocal %10 : vector<2x128xf32> -> vector<2x128xf32>
    %12 = arith.mulf %5, %11 : vector<2x128xf32>
    %c0_7 = arith.constant 0 : index
    %c0_8 = arith.constant 0 : index
    %13 = vector.load %arg4[%c0_7, %c0_8] : memref<128x64xf32, #tpu.memory_space<vmem>>, vector<128x64xf32>
    %cst_9 = arith.constant dense<0.000000e+00> : vector<2x64xf32>
    %14 = tpu.matmul %12, %13, %cst_9 {dimension_numbers = #tpu.dot_dimension_numbers<[1], [0], [0], [1], [0, 0, 1, 1], [], []>} : vector<2x128xf32>, vector<128x64xf32>, vector<2x64xf32> -> vector<2x64xf32>
    %c0_10 = arith.constant 0 : index
    %c0_11 = arith.constant 0 : index
    %15 = vector.load %arg5[%c0_10, %c0_11] : memref<1x64xf32, #tpu.memory_space<vmem>>, vector<1x64xf32>
    %16 = vector.broadcast %15 : vector<1x64xf32> to vector<2x64xf32>
    %17 = arith.addf %14, %16 : vector<2x64xf32>
    %cst_12 = arith.constant 0.000000e+00 : f32
    %18 = vector.broadcast %cst_12 : f32 to vector<2x64xf32>
    %19 = arith.subf %18, %17 : vector<2x64xf32>
    %20 = math.exp %19 : vector<2x64xf32>
    %cst_13 = arith.constant 1.000000e+00 : f32
    %21 = vector.broadcast %cst_13 : f32 to vector<2x64xf32>
    %22 = arith.addf %21, %20 : vector<2x64xf32>
    %23 = tpu.reciprocal %22 : vector<2x64xf32> -> vector<2x64xf32>
    %24 = arith.mulf %17, %23 : vector<2x64xf32>
    %c0_14 = arith.constant 0 : index
    %c0_15 = arith.constant 0 : index
    %25 = vector.load %arg6[%c0_14, %c0_15] : memref<64x4xf32, #tpu.memory_space<vmem>>, vector<64x4xf32>
    %cst_16 = arith.constant dense<0.000000e+00> : vector<2x4xf32>
    %26 = tpu.matmul %24, %25, %cst_16 {dimension_numbers = #tpu.dot_dimension_numbers<[1], [0], [0], [1], [0, 0, 1, 1], [], []>} : vector<2x64xf32>, vector<64x4xf32>, vector<2x4xf32> -> vector<2x4xf32>
    %c0_17 = arith.constant 0 : index
    %c0_18 = arith.constant 0 : index
    %27 = vector.load %arg7[%c0_17, %c0_18] : memref<1x4xf32, #tpu.memory_space<vmem>>, vector<1x4xf32>
    %28 = vector.broadcast %27 : vector<1x4xf32> to vector<2x4xf32>
    %29 = arith.addf %26, %28 : vector<2x4xf32>
    %c0_19 = arith.constant 0 : index
    %c0_20 = arith.constant 0 : index
    %30 = vector.load %arg8[%c0_19, %c0_20] : memref<2x4xf32, #tpu.memory_space<vmem>>, vector<2x4xf32>
    tpu.vector_store %arg8[%c0_19, %c0_20], %29 {strides = array<i32>} : memref<2x4xf32, #tpu.memory_space<vmem>>, vector<2x4xf32>,
    return
  }
  func.func @transform_0(%arg0: i32) -> (i32, i32) {
    %c0_i32 = arith.constant 0 : i32
    %c0_i32_0 = arith.constant 0 : i32
    %c0_i32_1 = arith.constant 0 : i32
    return %c0_i32, %c0_i32_0 : i32, i32
  }
  func.func @transform_1(%arg0: i32) -> (i32, i32) {
    %c0_i32 = arith.constant 0 : i32
    %c0_i32_0 = arith.constant 0 : i32
    %c0_i32_1 = arith.constant 0 : i32
    return %c0_i32, %c0_i32_0 : i32, i32
  }
  func.func @transform_2(%arg0: i32) -> (i32, i32) {
    %c0_i32 = arith.constant 0 : i32
    %c0_i32_0 = arith.constant 0 : i32
    %c0_i32_1 = arith.constant 0 : i32
    return %c0_i32, %c0_i32_0 : i32, i32
  }
  func.func @transform_3(%arg0: i32) -> (i32, i32) {
    %c0_i32 = arith.constant 0 : i32
    %c0_i32_0 = arith.constant 0 : i32
    %c0_i32_1 = arith.constant 0 : i32
    return %c0_i32, %c0_i32_0 : i32, i32
  }
  func.func @transform_4(%arg0: i32) -> (i32, i32) {
    %c0_i32 = arith.constant 0 : i32
    %c0_i32_0 = arith.constant 0 : i32
    %c0_i32_1 = arith.constant 0 : i32
    return %c0_i32, %c0_i32_0 : i32, i32
  }
  func.func @transform_5(%arg0: i32) -> (i32, i32) {
    %c0_i32 = arith.constant 0 : i32
    %c0_i32_0 = arith.constant 0 : i32
    %c0_i32_1 = arith.constant 0 : i32
    return %c0_i32, %c0_i32_0 : i32, i32
  }
  func.func @transform_6(%arg0: i32) -> (i32, i32) {
    %c0_i32 = arith.constant 0 : i32
    %c0_i32_0 = arith.constant 0 : i32
    %c0_i32_1 = arith.constant 0 : i32
    return %c0_i32, %c0_i32_0 : i32, i32
  }
  func.func @transform_7(%arg0: i32) -> (i32, i32) {
    %c0_i32 = arith.constant 0 : i32
    %c0_i32_0 = arith.constant 0 : i32
    %c0_i32_1 = arith.constant 0 : i32
    return %c0_i32, %c0_i32_0 : i32, i32
  }
}

</mosaic_0001>

<bundles_post_ra>
// kernel: image_regressor_forward.5
= control target key start
LH: loop header
LB: loop body
LE: loop exit
PB: predicated region body
PF: predicated region fallthrough
CT: control target
= control target key end

     0   :  { %s765_s12 = smov 0   ;;  %s954_s0 = inlined_call_operand.vmem [shape: f32[512,27], index: 0, kind: input, shape index: {}]   ;;  %s955_s1 = inlined_call_operand.vmem [shape: f32[27,16], index: 1, kind: input, shape index: {}]   ;;  %s956_s2 = inlined_call_operand.vmem [shape: f32[1,16], index: 2, kind: input, shape index: {}]   ;;  %s957_s3 = inlined_call_operand.vmem [shape: f32[512,16], index: 3, kind: output, shape index: {}]  }
   0x1 LB: > { %s568_s13 = sadd.s32 4294967295, %s742_s12   ;;  %p572_p0 = scmp.ge.s32.totalorder %s742_s12, 1  ;;  %s742_s12 = sphi %s765_s12, %s13_s12  }
   0x2   : > { %p138_p1 = scmp.lt.s32.totalorder %s742_s12, 5 }
   0x4   : > { %p139_p2 = pnand %p572_p0, %p138_p1 }
   0x5   : > { %v190_v0 = vld [vmem:[%s955_s1] sm:$0xff] (!%p139_p2)  ;;  %v191_v1 = vld [vmem:[%s955_s1 + $0x8] sm:$0xff] (!%p139_p2)  ;;  %v192_v2 = vld [vmem:[%s955_s1 + $0x10] sm:$0xff] (!%p139_p2)  ;;  %vm250_vm0 = vcmask (!%p139_p2), 1042432   ;;  %s573_s20 = sshll.u32 (!%p139_p2), %s568_s13, 4  ;;  %vm744_vm1 = vmmov (!%p139_p2), 1  }
   0x6   : > { %142 = sbr.rel (%p139_p2) target bundleno = 291 (0x123), region = 32  ;;  %v649_v3 = vpack.c.bf16 (!%p139_p2), %v191_v1, %v190_v0  ;;  %v193_v4 = vld [vmem:[%s955_s1 + $0x18] sm:$0x7] (!%p139_p2)  ;;  %p163_p3 = scmp.lt.s32.totalorder (!%p139_p2), %s573_s20, 63  ;;  %vm654_vm2 = vmpackc.low (!%p139_p2), %vm250_vm0, %vm744_vm1  ;;  %vm201_vm3 = vcmask (!%p139_p2), 220160   ;;  %vm495_vm4 = vcmask (!%p139_p2), 130048  }
   0x7   : > { %v653_v5 = vpack.c.bf16 (!%p139_p2), %v193_v4, %v192_v2  ;;  %v830_v22 = vld [vmem:[%s956_s2] ss:$0 sm:$0xff] (!%p139_p2) }
   0x8   : > { %650 = vmatprep.subr.bf16.mxu0 (!%p139_p2), %v649_v3  ;;  %659 = vmatprep.subr.bf16.mxu1 (!%p139_p2), %v649_v3 }
   0x9   : > { %652 = vmatpush3.bf16.msra.mxu0 (!%p139_p2), %v649_v3  ;;  %661 = vmatpush3.bf16.msra.mxu1 (!%p139_p2), %v649_v3 }
   0xa   : > { %655 = vmatprep.subr.msk.bf16.mxu0 (!%p139_p2), %vm654_vm2, %v653_v5  ;;  %660 = vmatprep.subr.msk.bf16.mxu1 (!%p139_p2), %vm654_vm2, %v653_v5 }
   0xd   : > { %s959_s20 = smov (!%p163_p3, %s573_s20), 63  ;;  %658 = vmatpush3.bf16.msk.msra.mxu0 %vm654_vm2, %v653_v5  ;;  %662 = vmatpush3.bf16.msk.msra.mxu1 %vm654_vm2, %v653_v5 }
   0xe   : > { %s574_s23 = sshll.u32 %s959_s20, 3 }
   0xf   : > { %s793_s26 = scalar_lea.vmem %s954_s0, %s574_s23  ;;  %s901_s4 = scalar_lea.vmem %s957_s3, %s574_s23 }
  0x10   : > { %v174_v6 = vld [vmem:[%s793_s26] sm:$0xff]  ;;  %v175_v8 = vld [vmem:[%s793_s26 + $0x8] sm:$0xff]  ;;  %v176_v10 = vld [vmem:[%s793_s26 + $0x10] sm:$0xff] }
  0x11   : > { %v182_v7 = vld [vmem:[%s793_s26 + $0x40] sm:$0xff]  ;;  %v183_v9 = vld [vmem:[%s793_s26 + $0x48] sm:$0xff]  ;;  %625 = vmatprep.mubr.msk.f32.mxu0 %vm201_vm3, %v174_v6  ;;  %v184_v11 = vld [vmem:[%s793_s26 + $0x50] sm:$0xff] }
  0x12   : > { %637 = vmatprep.mubr.msk.f32.mxu1 %vm201_vm3, %v182_v7  ;;  %626 = vmatmul.mubr.msk.f32.vlgmr.msra.gmra.mrb[0].mxu0 %vm201_vm3, %v175_v8  ;;  %v177_v12 = vld [vmem:[%s793_s26 + $0x18] sm:$0xff]  ;;  %v178_v14 = vld [vmem:[%s793_s26 + $0x20] sm:$0xff]  ;;  %v179_v16 = vld [vmem:[%s793_s26 + $0x28] sm:$0xff] }
  0x13   : > { %638 = vmatmul.mubr.msk.f32.vlgmr.msra.gmra.mrb[0].mxu1 %vm201_vm3, %v183_v9  ;;  %628 = vmatprep.mubr.msk.f32.mxu0 %vm201_vm3, %v176_v10  ;;  %v185_v13 = vld [vmem:[%s793_s26 + $0x58] sm:$0xff]  ;;  %v186_v15 = vld [vmem:[%s793_s26 + $0x60] sm:$0xff]  ;;  %v187_v17 = vld [vmem:[%s793_s26 + $0x68] sm:$0xff] }
  0x14   : > { %640 = vmatprep.mubr.msk.f32.mxu1 %vm201_vm3, %v184_v11  ;;  %v180_v18 = vld [vmem:[%s793_s26 + $0x30] sm:$0xff]  ;;  %v181_v20 = vld [vmem:[%s793_s26 + $0x38] sm:$0xff] }
  0x15   : > { %v188_v19 = vld [vmem:[%s793_s26 + $0x70] sm:$0xff]  ;;  %v189_v21 = vld [vmem:[%s793_s26 + $0x78] sm:$0xff] }
  0x16   : > { %629 = vmatmul.mubr.msk.f32.gmra.mrb[2].mxu0 %vm201_vm3, %v177_v12 }
  0x17   : > { %641 = vmatmul.mubr.msk.f32.gmra.mrb[2].mxu1 %vm201_vm3, %v185_v13  ;;  %631 = vmatprep.mubr.msk.f32.mxu0 %vm201_vm3, %v178_v14 }
  0x18   : > { %643 = vmatprep.mubr.msk.f32.mxu1 %vm201_vm3, %v186_v15 }
  0x1a   : > { %632 = vmatmul.mubr.msk.f32.gmra.mrb[4].mxu0 %vm201_vm3, %v179_v16 }
  0x1b   : > { %644 = vmatmul.mubr.msk.f32.gmra.mrb[4].mxu1 %vm201_vm3, %v187_v17  ;;  %634 = vmatprep.mubr.msk.f32.mxu0 %vm201_vm3, %v180_v18 }
  0x1c   : > { %646 = vmatprep.mubr.msk.f32.mxu1 %vm201_vm3, %v188_v19 }
  0x1e   : > { %635 = vmatmul.mubr.msk.f32.gmra.mrb[6].mxu0 %vm201_vm3, %v181_v20 }
  0x1f   : > { %647 = vmatmul.mubr.msk.f32.gmra.mrb[6].mxu1 %vm201_vm3, %v189_v21 }
  0xe5   : > { %v627_v23 = vpop.f32.mrb[0].mxu0 }
  0xe6   : > { %v639_v24 = vpop.f32.mrb[0].mxu1  ;;  %v833_v25 = vadd.f32 %v627_v23, %v830_v22  ;;  %v320_v27 = vpop.f32.mrb[1].mxu0 }
  0xe7   : > { %v836_v26 = vadd.f32 %v639_v24, %v830_v22  ;;  %v360_v28 = vpop.f32.mrb[1].mxu1  ;;  %v839_v29 = vadd.f32 %v830_v22, %v320_v27 }
  0xe8   : > { %v842_v30 = vadd.f32 %v830_v22, %v360_v28  ;;  %v400_v31 = vsub.f32 0.0, %v833_v25 }
  0xe9   : > { %v408_v32 = vsub.f32 0.0, %v836_v26  ;;  %v399_v33 = vsub.f32 0.0, %v839_v29  ;;  %v630_v35 = vpop.f32.mrb[2].mxu0 }
  0xea   : > { %v407_v34 = vsub.f32 0.0, %v842_v30  ;;  %v642_v36 = vpop.f32.mrb[2].mxu1  ;;  %v417_v37 = vmul.f32 1.442695, %v400_v31  ;;  %v849_v39 = vadd.f32 %v630_v35, %v830_v22  ;;  %v330_v41 = vpop.f32.mrb[3].mxu0 }
  0xeb   : > { %v433_v38 = vmul.f32 1.442695, %v408_v32  ;;  %v852_v40 = vadd.f32 %v642_v36, %v830_v22  ;;  %v370_v42 = vpop.f32.mrb[3].mxu1  ;;  %v415_v43 = vmul.f32 1.442695, %v399_v33  ;;  %v855_v45 = vadd.f32 %v830_v22, %v330_v41 }
  0xec   : > { %v431_v44 = vmul.f32 1.442695, %v407_v34  ;;  %v858_v46 = vadd.f32 %v830_v22, %v370_v42  ;;  %672 = vpow2.f32 %v417_v37  ;;  %v402_v47 = vsub.f32 0.0, %v849_v39 }
  0xed   : > { %v410_v48 = vsub.f32 0.0, %v852_v40  ;;  %674 = vpow2.f32 %v433_v38  ;;  %v401_v49 = vsub.f32 0.0, %v855_v45  ;;  %v633_v51 = vpop.f32.mrb[4].mxu0 }
  0xee   : > { %v409_v50 = vsub.f32 0.0, %v858_v46  ;;  %v645_v52 = vpop.f32.mrb[4].mxu1  ;;  %676 = vpow2.f32 %v415_v43  ;;  %v421_v53 = vmul.f32 1.442695, %v402_v47  ;;  %v865_v55 = vadd.f32 %v633_v51, %v830_v22  ;;  %v340_v56 = vpop.f32.mrb[5].mxu0 }
  0xef   : > { %v437_v54 = vmul.f32 1.442695, %v410_v48  ;;  %v380_v57 = vpop.f32.mrb[5].mxu1  ;;  %678 = vpow2.f32 %v431_v44  ;;  %v419_v58 = vmul.f32 1.442695, %v401_v49  ;;  %v868_v60 = vadd.f32 %v645_v52, %v830_v22 }
  0xf0   : > { %v435_v59 = vmul.f32 1.442695, %v409_v50  ;;  %680 = vpow2.f32 %v421_v53  ;;  %v404_v61 = vsub.f32 0.0, %v865_v55  ;;  %v872_v62 = vadd.f32 %v830_v22, %v340_v56 }
  0xf1   : > { %v875_v63 = vadd.f32 %v830_v22, %v380_v57  ;;  %682 = vpow2.f32 %v437_v54  ;;  %v412_v0 = vsub.f32 0.0, %v868_v60  ;;  %v636_v1 = vpop.f32.mrb[6].mxu0 }
  0xf2   : > { %v648_v2 = vpop.f32.mrb[6].mxu1  ;;  %684 = vpow2.f32 %v419_v58  ;;  %v425_v3 = vmul.f32 1.442695, %v404_v61  ;;  %v403_v4 = vsub.f32 0.0, %v872_v62  ;;  %v350_v6 = vpop.f32.mrb[7].mxu0  ;;  %v881_v18 = vadd.f32 %v636_v1, %v830_v22 }
  0xf3   : > { %v411_v5 = vsub.f32 0.0, %v875_v63  ;;  %v390_v7 = vpop.f32.mrb[7].mxu1  ;;  %686 = vpow2.f32 %v435_v59  ;;  %v441_v8 = vmul.f32 1.442695, %v412_v0  ;;  %v884_v21 = vadd.f32 %v648_v2, %v830_v22 }
  0xf4   : > { %688 = vpow2.f32 %v425_v3  ;;  %v423_v9 = vmul.f32 1.442695, %v403_v4  ;;  %v887_v27 = vadd.f32 %v830_v22, %v350_v6  ;;  %v890_v32 = vadd.f32 %v830_v22, %v390_v7 }
  0xf5   : > { %v439_v10 = vmul.f32 1.442695, %v411_v5  ;;  %690 = vpow2.f32 %v441_v8  ;;  %v406_v35 = vsub.f32 0.0, %v881_v18  ;;  %v414_v38 = vsub.f32 0.0, %v884_v21 }
  0xf6   : > { %v673_v11 = vpop.eup %672  ;;  %692 = vpow2.f32 %v423_v9  ;;  %v405_v43 = vsub.f32 0.0, %v887_v27  ;;  %v413_v47 = vsub.f32 0.0, %v890_v32 }
  0xf7   : > { %v675_v12 = vpop.eup %674  ;;  %v448_v13 = vadd.f32 1.0, %v673_v11  ;;  %694 = vpow2.f32 %v439_v10  ;;  %v429_v50 = vmul.f32 1.442695, %v406_v35  ;;  %v445_v52 = vmul.f32 1.442695, %v414_v38 }
  0xf8   : > { %v677_v14 = vpop.eup %676  ;;  %v456_v15 = vadd.f32 1.0, %v675_v12  ;;  %v427_v54 = vmul.f32 1.442695, %v405_v43  ;;  %v443_v58 = vmul.f32 1.442695, %v413_v47 }
  0xf9   : > { %v679_v16 = vpop.eup %678  ;;  %696 = vrcp.f32 %v448_v13  ;;  %v447_v17 = vadd.f32 1.0, %v677_v14 }
  0xfa   : > { %v681_v19 = vpop.eup %680  ;;  %698 = vrcp.f32 %v456_v15  ;;  %v455_v20 = vadd.f32 1.0, %v679_v16 }
  0xfb   : > { %v683_v23 = vpop.eup %682  ;;  %700 = vrcp.f32 %v447_v17  ;;  %v450_v24 = vadd.f32 1.0, %v681_v19 }
  0xfc   : > { %v685_v28 = vpop.eup %684  ;;  %702 = vrcp.f32 %v455_v20  ;;  %v458_v31 = vadd.f32 1.0, %v683_v23 }
  0xfd   : > { %v687_v33 = vpop.eup %686  ;;  %704 = vrcp.f32 %v450_v24  ;;  %v449_v34 = vadd.f32 1.0, %v685_v28 }
  0xfe   : > { %v689_v36 = vpop.eup %688  ;;  %706 = vrcp.f32 %v458_v31  ;;  %v457_v37 = vadd.f32 1.0, %v687_v33 }
  0xff   : > { %v691_v41 = vpop.eup %690  ;;  %708 = vrcp.f32 %v449_v34  ;;  %v452_v42 = vadd.f32 1.0, %v689_v36 }
 0x100   : > { %v693_v44 = vpop.eup %692  ;;  %710 = vrcp.f32 %v457_v37  ;;  %v460_v22 = vadd.f32 1.0, %v691_v41 }
 0x101   : > { %v695_v48 = vpop.eup %694  ;;  %712 = vrcp.f32 %v452_v42  ;;  %v451_v49 = vadd.f32 1.0, %v693_v44 }
 0x102   : > { %714 = vrcp.f32 %v460_v22  ;;  %v459_v51 = vadd.f32 1.0, %v695_v48 }
 0x103   : > { %v697_v53 = vpop.eup %696  ;;  %716 = vrcp.f32 %v451_v49 }
 0x104   : > { %v699_v56 = vpop.eup %698  ;;  %v480_v57 = vmul.f32 %v697_v53, %v833_v25  ;;  %718 = vrcp.f32 %v459_v51 }
 0x105   : > { %v701_v59 = vpop.eup %700  ;;  %v488_v61 = vmul.f32 %v699_v56, %v836_v26  ;;  %720 = vpow2.f32 %v429_v50 }
 0x106   : > { %v703_v0 = vpop.eup %702  ;;  %497 = vst.msk [vmem:[%s901_s4 + $0x8] sm:$0xff] %vm495_vm4, %v480_v57  ;;  %v479_v1 = vmul.f32 %v701_v59, %v839_v29  ;;  %722 = vpow2.f32 %v445_v52 }
 0x107   : > { %v705_v2 = vpop.eup %704  ;;  %505 = vst.msk [vmem:[%s901_s4 + $0x48] sm:$0xff] %vm495_vm4, %v488_v61  ;;  %v487_v25 = vmul.f32 %v703_v0, %v842_v30  ;;  %724 = vpow2.f32 %v427_v54 }
 0x108   : > { %v707_v3 = vpop.eup %706  ;;  %496 = vst.msk [vmem:[%s901_s4] sm:$0xff] %vm495_vm4, %v479_v1  ;;  %v482_v26 = vmul.f32 %v705_v2, %v849_v39  ;;  %726 = vpow2.f32 %v443_v58 }
 0x109   : > { %v709_v4 = vpop.eup %708  ;;  %504 = vst.msk [vmem:[%s901_s4 + $0x40] sm:$0xff] %vm495_vm4, %v487_v25  ;;  %v490_v29 = vmul.f32 %v707_v3, %v852_v40 }
 0x10a   : > { %v711_v5 = vpop.eup %710  ;;  %499 = vst.msk [vmem:[%s901_s4 + $0x18] sm:$0xff] %vm495_vm4, %v482_v26  ;;  %v481_v30 = vmul.f32 %v709_v4, %v855_v45 }
 0x10b   : > { %v713_v6 = vpop.eup %712  ;;  %507 = vst.msk [vmem:[%s901_s4 + $0x58] sm:$0xff] %vm495_vm4, %v490_v29  ;;  %v489_v7 = vmul.f32 %v711_v5, %v858_v46 }
 0x10c   : > { %v715_v39 = vpop.eup %714  ;;  %498 = vst.msk [vmem:[%s901_s4 + $0x10] sm:$0xff] %vm495_vm4, %v481_v30  ;;  %v484_v8 = vmul.f32 %v713_v6, %v865_v55 }
 0x10d   : > { %v717_v9 = vpop.eup %716  ;;  %506 = vst.msk [vmem:[%s901_s4 + $0x50] sm:$0xff] %vm495_vm4, %v489_v7  ;;  %v492_v40 = vmul.f32 %v715_v39, %v868_v60 }
 0x10e   : > { %v719_v10 = vpop.eup %718  ;;  %501 = vst.msk [vmem:[%s901_s4 + $0x28] sm:$0xff] %vm495_vm4, %v484_v8  ;;  %v483_v45 = vmul.f32 %v717_v9, %v872_v62 }
 0x10f   : > { %v721_v11 = vpop.eup %720  ;;  %509 = vst.msk [vmem:[%s901_s4 + $0x68] sm:$0xff] %vm495_vm4, %v492_v40  ;;  %v491_v46 = vmul.f32 %v719_v10, %v875_v63 }
 0x110   : > { %v723_v12 = vpop.eup %722  ;;  %500 = vst.msk [vmem:[%s901_s4 + $0x20] sm:$0xff] %vm495_vm4, %v483_v45  ;;  %v454_v13 = vadd.f32 1.0, %v721_v11 }
 0x111   : > { %v725_v55 = vpop.eup %724  ;;  %508 = vst.msk [vmem:[%s901_s4 + $0x60] sm:$0xff] %vm495_vm4, %v491_v46  ;;  %v462_v14 = vadd.f32 1.0, %v723_v12 }
 0x112   : > { %v727_v60 = vpop.eup %726  ;;  %728 = vrcp.f32 %v454_v13  ;;  %v453_v15 = vadd.f32 1.0, %v725_v55 }
 0x113   : > { %730 = vrcp.f32 %v462_v14  ;;  %v461_v62 = vadd.f32 1.0, %v727_v60 }
 0x114   : > { %732 = vrcp.f32 %v453_v15 }
 0x115   : > { %734 = vrcp.f32 %v461_v62 }
 0x11c   : > { %v729_v63 = vpop.eup %728 }
 0x11d   : > { %v731_v16 = vpop.eup %730  ;;  %v486_v17 = vmul.f32 %v729_v63, %v881_v18 }
 0x11e   : > { %v733_v19 = vpop.eup %732  ;;  %v494_v20 = vmul.f32 %v731_v16, %v884_v21 }
 0x11f   : > { %v735_v23 = vpop.eup %734  ;;  %503 = vst.msk [vmem:[%s901_s4 + $0x38] sm:$0xff] %vm495_vm4, %v486_v17  ;;  %v485_v24 = vmul.f32 %v733_v19, %v887_v27 }
 0x120   : > { %511 = vst.msk [vmem:[%s901_s4 + $0x78] sm:$0xff] %vm495_vm4, %v494_v20  ;;  %v493_v28 = vmul.f32 %v735_v23, %v890_v32 }
 0x121   : > { %502 = vst.msk [vmem:[%s901_s4 + $0x30] sm:$0xff] %vm495_vm4, %v485_v24 }
 0x122   : > { %510 = vst.msk [vmem:[%s901_s4 + $0x70] sm:$0xff] %vm495_vm4, %v493_v28 }
 0x123 PF: > { %s13_s12 = sadd.s32 1, %s742_s12  }
 0x124   : > { %p10_p4 = scmp.ge.s32.totalorder %s13_s12, 6  }
 0x126   :  { %12 = sbr.rel (!%p10_p4) target bundleno = 1 (0x1), region = 62 }

// kernel: image_regressor_forward.6
= control target key start
LH: loop header
LB: loop body
LE: loop exit
PB: predicated region body
PF: predicated region fallthrough
CT: control target
= control target key end

     0   :  { %s598_s12 = smov 0   ;;  %s752_s0 = inlined_call_operand.vmem [shape: f32[128,144], index: 0, kind: input, shape index: {}]   ;;  %s753_s1 = inlined_call_operand.vmem [shape: f32[144,32], index: 1, kind: input, shape index: {}]   ;;  %s754_s2 = inlined_call_operand.vmem [shape: f32[1,32], index: 2, kind: input, shape index: {}]   ;;  %s755_s3 = inlined_call_operand.vmem [shape: f32[128,32], index: 3, kind: output, shape index: {}]  }
   0x1 LB: > { %s461_s13 = sadd.s32 4294967295, %s575_s12   ;;  %p465_p0 = scmp.ge.s32.totalorder %s575_s12, 1  ;;  %s575_s12 = sphi %s598_s12, %s13_s12  }
   0x2   : > { %p139_p1 = scmp.lt.s32.totalorder %s575_s12, 3 }
   0x4   : > { %p140_p2 = pnand %p465_p0, %p139_p1 }
   0x5   : > { %v193_v0 = vld [vmem:[%s753_s1] sm:$0xff] (!%p140_p2)  ;;  %v194_v1 = vld [vmem:[%s753_s1 + $0x8] sm:$0xff] (!%p140_p2)  ;;  %v195_v2 = vld [vmem:[%s753_s1 + $0x10] sm:$0xff] (!%p140_p2)  ;;  %s466_s20 = sshll.u32 (!%p140_p2), %s461_s13, 3  ;;  %v577_v3 = vmov (!%p140_p2), 0.0|0.0   ;;  %vm218_vm0 = vcmask (!%p140_p2), 130048  }
   0x6   : > { %143 = sbr.rel (%p140_p2) target bundleno = 303 (0x12f), region = 32  ;;  %483 = vmatprep.subr.bf16.mxu0 (!%p140_p2), %v577_v3  ;;  %510 = vmatprep.subr.bf16.mxu1 (!%p140_p2), %v577_v3  ;;  %v484_v4 = vpack.c.bf16 (!%p140_p2), %v194_v1, %v193_v0  ;;  %v196_v5 = vld [vmem:[%s753_s1 + $0x18] sm:$0xff] (!%p140_p2)  ;;  %p165_p3 = scmp.lt.s32.totalorder (!%p140_p2), %s466_s20, 15  ;;  %v197_v7 = vld [vmem:[%s753_s1 + $0x20] sm:$0xff] (!%p140_p2)  ;;  %v198_v8 = vld [vmem:[%s753_s1 + $0x28] sm:$0xff] (!%p140_p2)  ;;  %vm396_vm1 = vcmask (!%p140_p2), 261120  }
   0x7   : > { %v487_v6 = vpack.c.bf16 (!%p140_p2), %v196_v5, %v195_v2  ;;  %v490_v9 = vpack.c.bf16 (!%p140_p2), %v198_v8, %v197_v7  ;;  %v199_v12 = vld [vmem:[%s753_s1 + $0x30] sm:$0xff] (!%p140_p2)  ;;  %v200_v13 = vld [vmem:[%s753_s1 + $0x38] sm:$0xff] (!%p140_p2)  ;;  %v201_v15 = vld [vmem:[%s753_s1 + $0x40] sm:$0xff] (!%p140_p2) }
   0x8   : > { %485 = vmatpush1.bf16.msra.mxu0 (!%p140_p2), %v484_v4  ;;  %519 = vmatpush1.bf16.msra.mxu1 (!%p140_p2), %v484_v4  ;;  %v493_v14 = vpack.c.bf16 (!%p140_p2), %v200_v13, %v199_v12  ;;  %v202_v16 = vld [vmem:[%s753_s1 + $0x48] sm:$0xff] (!%p140_p2)  ;;  %v203_v18 = vld [vmem:[%s753_s1 + $0x50] sm:$0xff] (!%p140_p2)  ;;  %v204_v19 = vld [vmem:[%s753_s1 + $0x58] sm:$0xff] (!%p140_p2) }
   0x9   : > { %486 = vmatprep.subr.bf16.mxu0 (!%p140_p2), %v577_v3  ;;  %511 = vmatprep.subr.bf16.mxu1 (!%p140_p2), %v577_v3  ;;  %v496_v17 = vpack.c.bf16 (!%p140_p2), %v202_v16, %v201_v15  ;;  %v499_v20 = vpack.c.bf16 (!%p140_p2), %v204_v19, %v203_v18  ;;  %v205_v21 = vld [vmem:[%s753_s1 + $0x60] sm:$0xff] (!%p140_p2)  ;;  %v206_v22 = vld [vmem:[%s753_s1 + $0x68] sm:$0xff] (!%p140_p2)  ;;  %v207_v24 = vld [vmem:[%s753_s1 + $0x70] sm:$0xff] (!%p140_p2) }
   0xa   : > { %v502_v23 = vpack.c.bf16 (!%p140_p2), %v206_v22, %v205_v21  ;;  %v208_v25 = vld [vmem:[%s753_s1 + $0x78] sm:$0xff] (!%p140_p2)  ;;  %v209_v27 = vld [vmem:[%s753_s1 + $0x80] sm:$0xff] (!%p140_p2)  ;;  %v210_v28 = vld [vmem:[%s753_s1 + $0x88] sm:$0xff] (!%p140_p2) }
   0xb   : > { %v505_v26 = vpack.c.bf16 (!%p140_p2), %v208_v25, %v207_v24  ;;  %v508_v29 = vpack.c.bf16 (!%p140_p2), %v210_v28, %v209_v27  ;;  %v471_v44 = vld [vmem:[%s754_s2] ss:$0 sm:$0xff] (!%p140_p2) }
   0xc   : > { %488 = vmatpush1.bf16.msra.mxu0 (!%p140_p2), %v487_v6  ;;  %520 = vmatpush1.bf16.msra.mxu1 (!%p140_p2), %v487_v6 }
   0xd   : > { %s757_s20 = smov (!%p165_p3, %s466_s20), 15  ;;  %489 = vmatprep.subr.bf16.mxu0 %v577_v3  ;;  %512 = vmatprep.subr.bf16.mxu1 %v577_v3 }
   0xe   : > { %s482_s27 = sshll.u32 %s757_s20, 4 }
   0xf   : > { %s634_s30 = scalar_lea.vmem %s752_s0, %s482_s27 }
  0x10   : > { %v178_v10 = vld [vmem:[%s634_s30 + $0x8] sm:$0xff]  ;;  %491 = vmatpush1.bf16.msra.mxu0 %v490_v9  ;;  %521 = vmatpush1.bf16.msra.mxu1 %v490_v9  ;;  %v177_v30 = vld [vmem:[%s634_s30] sm:$0xff]  ;;  %v180_v32 = vld [vmem:[%s634_s30 + $0x18] sm:$0xff] }
  0x11   : > { %v186_v11 = vld [vmem:[%s634_s30 + $0x48] sm:$0xff]  ;;  %472 = vmatprep.mubr.msk.f32.mxu0 %vm218_vm0, %v178_v10  ;;  %492 = vmatprep.subr.bf16.mxu0 %v577_v3  ;;  %v185_v31 = vld [vmem:[%s634_s30 + $0x40] sm:$0xff]  ;;  %v188_v33 = vld [vmem:[%s634_s30 + $0x58] sm:$0xff] }
  0x12   : > { %476 = vmatprep.mubr.msk.f32.mxu1 %vm218_vm0, %v186_v11  ;;  %513 = vmatprep.subr.bf16.mxu1 %v577_v3  ;;  %v179_v34 = vld [vmem:[%s634_s30 + $0x10] sm:$0xff]  ;;  %v182_v36 = vld [vmem:[%s634_s30 + $0x28] sm:$0xff]  ;;  %v181_v38 = vld [vmem:[%s634_s30 + $0x20] sm:$0xff] }
  0x13   : > { %v187_v35 = vld [vmem:[%s634_s30 + $0x50] sm:$0xff]  ;;  %v190_v37 = vld [vmem:[%s634_s30 + $0x68] sm:$0xff]  ;;  %v189_v39 = vld [vmem:[%s634_s30 + $0x60] sm:$0xff] }
  0x14   : > { %494 = vmatpush1.bf16.msra.mxu0 %v493_v14  ;;  %522 = vmatpush1.bf16.msra.mxu1 %v493_v14  ;;  %v184_v40 = vld [vmem:[%s634_s30 + $0x38] sm:$0xff]  ;;  %v183_v42 = vld [vmem:[%s634_s30 + $0x30] sm:$0xff] }
  0x15   : > { %495 = vmatprep.subr.bf16.mxu0 %v577_v3  ;;  %514 = vmatprep.subr.bf16.mxu1 %v577_v3  ;;  %v192_v41 = vld [vmem:[%s634_s30 + $0x78] sm:$0xff]  ;;  %v191_v43 = vld [vmem:[%s634_s30 + $0x70] sm:$0xff]  ;;  %s470_s30 = sshll.u32 %s757_s20, 3 }
  0x16   : > { %s175_s8 = scalar_lea.vmem %s755_s3, %s470_s30 }
  0x18   : > { %497 = vmatpush1.bf16.msra.mxu0 %v496_v17  ;;  %523 = vmatpush1.bf16.msra.mxu1 %v496_v17 }
  0x19   : > { %498 = vmatprep.subr.bf16.mxu0 %v577_v3  ;;  %515 = vmatprep.subr.bf16.mxu1 %v577_v3 }
  0x1c   : > { %500 = vmatpush1.bf16.msra.mxu0 %v499_v20  ;;  %524 = vmatpush1.bf16.msra.mxu1 %v499_v20 }
  0x1d   : > { %501 = vmatprep.subr.bf16.mxu0 %v577_v3  ;;  %516 = vmatprep.subr.bf16.mxu1 %v577_v3 }
  0x20   : > { %503 = vmatpush1.bf16.msra.mxu0 %v502_v23  ;;  %525 = vmatpush1.bf16.msra.mxu1 %v502_v23 }
  0x21   : > { %504 = vmatprep.subr.bf16.mxu0 %v577_v3  ;;  %517 = vmatprep.subr.bf16.mxu1 %v577_v3 }
  0x24   : > { %506 = vmatpush1.bf16.msra.mxu0 %v505_v26  ;;  %526 = vmatpush1.bf16.msra.mxu1 %v505_v26 }
  0x25   : > { %507 = vmatprep.subr.bf16.mxu0 %v577_v3  ;;  %518 = vmatprep.subr.bf16.mxu1 %v577_v3 }
  0x28   : > { %509 = vmatpush1.bf16.msra.mxu0 %v508_v29  ;;  %527 = vmatpush1.bf16.msra.mxu1 %v508_v29 }
  0x2b   : > { %308 = vmatmul.mubr.f32.vlgmr.msra.gmra.mrb[0].mxu0 %v177_v30  ;;  %328 = vmatmul.mubr.f32.vlgmr.msra.gmra.mrb[0].mxu1 %v185_v31 }
  0x2c   : > { %473 = vmatprep.mubr.msk.f32.mxu0 %vm218_vm0, %v180_v32  ;;  %477 = vmatprep.mubr.msk.f32.mxu1 %vm218_vm0, %v188_v33 }
  0x2f   : > { %313 = vmatmul.mubr.f32.gmra.mrb[2].mxu0 %v179_v34  ;;  %333 = vmatmul.mubr.f32.gmra.mrb[2].mxu1 %v187_v35 }
  0x30   : > { %474 = vmatprep.mubr.msk.f32.mxu0 %vm218_vm0, %v182_v36  ;;  %478 = vmatprep.mubr.msk.f32.mxu1 %vm218_vm0, %v190_v37 }
  0x33   : > { %318 = vmatmul.mubr.f32.gmra.mrb[4].mxu0 %v181_v38  ;;  %338 = vmatmul.mubr.f32.gmra.mrb[4].mxu1 %v189_v39 }
  0x34   : > { %475 = vmatprep.mubr.msk.f32.mxu0 %vm218_vm0, %v184_v40  ;;  %479 = vmatprep.mubr.msk.f32.mxu1 %vm218_vm0, %v192_v41 }
  0x37   : > { %323 = vmatmul.mubr.f32.gmra.mrb[6].mxu0 %v183_v42  ;;  %343 = vmatmul.mubr.f32.gmra.mrb[6].mxu1 %v191_v43 }
  0xfe   : > { %v309_v45 = vpop.f32.mrb[0].mxu0  ;;  %v329_v46 = vpop.f32.mrb[0].mxu1 }
  0xff   : > { %v713_v47 = vadd.f32 %v471_v44, %v309_v45  ;;  %v715_v48 = vadd.f32 %v471_v44, %v329_v46  ;;  %v311_v49 = vpop.f32.mrb[1].mxu0  ;;  %v331_v50 = vpop.f32.mrb[1].mxu1 }
 0x101   : > { %v348_v51 = vsub.f32 0.0, %v713_v47  ;;  %v352_v52 = vsub.f32 0.0, %v715_v48 }
 0x102   : > { %v314_v53 = vpop.f32.mrb[2].mxu0  ;;  %v334_v54 = vpop.f32.mrb[2].mxu1 }
 0x103   : > { %v356_v55 = vmul.f32 1.442695, %v348_v51  ;;  %v364_v56 = vmul.f32 1.442695, %v352_v52  ;;  %v719_v57 = vadd.f32 %v471_v44, %v314_v53  ;;  %v721_v58 = vadd.f32 %v471_v44, %v334_v54  ;;  %v316_v59 = vpop.f32.mrb[3].mxu0  ;;  %v336_v60 = vpop.f32.mrb[3].mxu1 }
 0x105   : > { %537 = vpow2.f32 %v356_v55  ;;  %v349_v61 = vsub.f32 0.0, %v719_v57  ;;  %v353_v62 = vsub.f32 0.0, %v721_v58 }
 0x106   : > { %539 = vpow2.f32 %v364_v56  ;;  %v319_v63 = vpop.f32.mrb[4].mxu0  ;;  %v339_v0 = vpop.f32.mrb[4].mxu1 }
 0x107   : > { %v358_v1 = vmul.f32 1.442695, %v349_v61  ;;  %v366_v2 = vmul.f32 1.442695, %v353_v62  ;;  %v725_v3 = vadd.f32 %v471_v44, %v319_v63  ;;  %v727_v4 = vadd.f32 %v471_v44, %v339_v0  ;;  %v321_v5 = vpop.f32.mrb[5].mxu0  ;;  %v341_v6 = vpop.f32.mrb[5].mxu1 }
 0x109   : > { %541 = vpow2.f32 %v358_v1  ;;  %v350_v7 = vsub.f32 0.0, %v725_v3  ;;  %v354_v8 = vsub.f32 0.0, %v727_v4 }
 0x10a   : > { %543 = vpow2.f32 %v366_v2  ;;  %v324_v9 = vpop.f32.mrb[6].mxu0  ;;  %v344_v10 = vpop.f32.mrb[6].mxu1 }
 0x10b   : > { %v360_v11 = vmul.f32 1.442695, %v350_v7  ;;  %v368_v12 = vmul.f32 1.442695, %v354_v8  ;;  %v325_v13 = vadd.f32 %v471_v44, %v324_v9  ;;  %v345_v14 = vadd.f32 %v471_v44, %v344_v10  ;;  %v326_v15 = vpop.f32.mrb[7].mxu0  ;;  %v346_v16 = vpop.f32.mrb[7].mxu1 }
 0x10d   : > { %545 = vpow2.f32 %v360_v11  ;;  %v351_v17 = vsub.f32 0.0, %v325_v13  ;;  %v355_v18 = vsub.f32 0.0, %v345_v14 }
 0x10e   : > { %547 = vpow2.f32 %v368_v12 }
 0x10f   : > { %v538_v19 = vpop.eup %537  ;;  %v362_v20 = vmul.f32 1.442695, %v351_v17  ;;  %v370_v23 = vmul.f32 1.442695, %v355_v18 }
 0x110   : > { %v540_v21 = vpop.eup %539  ;;  %v372_v22 = vadd.f32 1.0, %v538_v19 }
 0x111   : > { %v376_v24 = vadd.f32 1.0, %v540_v21  ;;  %549 = vpow2.f32 %v362_v20 }
 0x112   : > { %551 = vrcp.f32 %v372_v22 }
 0x113   : > { %v542_v25 = vpop.eup %541  ;;  %553 = vrcp.f32 %v376_v24 }
 0x114   : > { %v544_v26 = vpop.eup %543  ;;  %v373_v27 = vadd.f32 1.0, %v542_v25  ;;  %555 = vpow2.f32 %v370_v23 }
 0x115   : > { %v377_v28 = vadd.f32 1.0, %v544_v26 }
 0x116   : > { %557 = vrcp.f32 %v373_v27 }
 0x117   : > { %v546_v29 = vpop.eup %545  ;;  %559 = vrcp.f32 %v377_v28 }
 0x118   : > { %v548_v30 = vpop.eup %547  ;;  %v374_v31 = vadd.f32 1.0, %v546_v29 }
 0x119   : > { %v378_v32 = vadd.f32 1.0, %v548_v30 }
 0x11a   : > { %561 = vrcp.f32 %v374_v31 }
 0x11b   : > { %v550_v33 = vpop.eup %549  ;;  %563 = vrcp.f32 %v378_v32 }
 0x11c   : > { %v552_v34 = vpop.eup %551  ;;  %v375_v35 = vadd.f32 1.0, %v550_v33 }
 0x11d   : > { %v554_v36 = vpop.eup %553  ;;  %v388_v37 = vmul.f32 %v552_v34, %v713_v47 }
 0x11e   : > { %v556_v38 = vpop.eup %555  ;;  %v392_v39 = vmul.f32 %v554_v36, %v715_v48  ;;  %565 = vrcp.f32 %v375_v35 }
 0x11f   : > { %397 = vst.msk [vmem:[%s175_s8] sm:$0xff] %vm396_vm1, %v388_v37  ;;  %v379_v40 = vadd.f32 1.0, %v556_v38 }
 0x120   : > { %v558_v41 = vpop.eup %557  ;;  %401 = vst.msk [vmem:[%s175_s8 + $0x20] sm:$0xff] %vm396_vm1, %v392_v39 }
 0x121   : > { %v560_v42 = vpop.eup %559  ;;  %v389_v43 = vmul.f32 %v558_v41, %v719_v57  ;;  %567 = vrcp.f32 %v379_v40 }
 0x122   : > { %v393_v44 = vmul.f32 %v560_v42, %v721_v58 }
 0x123   : > { %398 = vst.msk [vmem:[%s175_s8 + $0x8] sm:$0xff] %vm396_vm1, %v389_v43 }
 0x124   : > { %v562_v45 = vpop.eup %561  ;;  %402 = vst.msk [vmem:[%s175_s8 + $0x28] sm:$0xff] %vm396_vm1, %v393_v44 }
 0x125   : > { %v564_v46 = vpop.eup %563  ;;  %v390_v47 = vmul.f32 %v562_v45, %v725_v3 }
 0x126   : > { %v394_v48 = vmul.f32 %v564_v46, %v727_v4 }
 0x127   : > { %399 = vst.msk [vmem:[%s175_s8 + $0x10] sm:$0xff] %vm396_vm1, %v390_v47 }
 0x128   : > { %v566_v49 = vpop.eup %565  ;;  %403 = vst.msk [vmem:[%s175_s8 + $0x30] sm:$0xff] %vm396_vm1, %v394_v48 }
 0x129   : > { %v391_v50 = vmul.f32 %v566_v49, %v325_v13 }
 0x12b   : > { %v568_v51 = vpop.eup %567  ;;  %400 = vst.msk [vmem:[%s175_s8 + $0x18] sm:$0xff] %vm396_vm1, %v391_v50 }
 0x12c   : > { %v395_v52 = vmul.f32 %v568_v51, %v345_v14 }
 0x12e   : > { %404 = vst.msk [vmem:[%s175_s8 + $0x38] sm:$0xff] %vm396_vm1, %v395_v52 }
 0x12f PF: > { %s13_s12 = sadd.s32 1, %s575_s12  }
 0x130   : > { %p10_p4 = scmp.ge.s32.totalorder %s13_s12, 4  }
 0x132   :  { %12 = sbr.rel (!%p10_p4) target bundleno = 1 (0x1), region = 62 }

// kernel: image_regressor_forward.7
= control target key start
LH: loop header
LB: loop body
LE: loop exit
PB: predicated region body
PF: predicated region fallthrough
CT: control target
= control target key end

     0   :  { %vm69_vm0 = vcmask 261120   ;;  %vm276_vm1 = vcmask 523264   ;;  %s595_s1 = inlined_call_operand.vmem [shape: f32[288,64], index: 1, kind: input, shape index: {}]   ;;  %s596_s0 = inlined_call_operand.vmem [shape: f32[32,288], index: 0, kind: input, shape index: {}]   ;;  %s597_s2 = inlined_call_operand.vmem [shape: f32[1,64], index: 2, kind: input, shape index: {}]   ;;  %s598_s3 = inlined_call_operand.vmem [shape: f32[32,64], index: 3, kind: output, shape index: {}]  }
   0x1   :  { %v42_v0 = vld [vmem:[%s595_s1 + $0x80] sm:$0xff]  ;;  %v43_v1 = vld [vmem:[%s595_s1 + $0x88] sm:$0xff]  ;;  %v44_v5 = vld [vmem:[%s595_s1 + $0x90] sm:$0xff] }
   0x2   :  { %v26_v2 = vld [vmem:[%s595_s1] sm:$0xff]  ;;  %v356_v3 = vpack.c.bf16 %v43_v1, %v42_v0  ;;  %v27_v4 = vld [vmem:[%s595_s1 + $0x8] sm:$0xff]  ;;  %v45_v6 = vld [vmem:[%s595_s1 + $0x98] sm:$0xff] }
   0x3   :  { %v358_v7 = vpack.c.bf16 %v27_v4, %v26_v2  ;;  %v360_v8 = vpack.c.bf16 %v45_v6, %v44_v5  ;;  %v28_v9 = vld [vmem:[%s595_s1 + $0x10] sm:$0xff]  ;;  %v29_v10 = vld [vmem:[%s595_s1 + $0x18] sm:$0xff]  ;;  %v46_v11 = vld [vmem:[%s595_s1 + $0xa0] sm:$0xff] }
   0x4   :  { %357 = vmatprep.subr.bf16.mxu0 %v356_v3  ;;  %v47_v12 = vld [vmem:[%s595_s1 + $0xa8] sm:$0xff]  ;;  %v362_v13 = vpack.c.bf16 %v29_v10, %v28_v9  ;;  %v30_v15 = vld [vmem:[%s595_s1 + $0x20] sm:$0xff]  ;;  %v48_v17 = vld [vmem:[%s595_s1 + $0xb0] sm:$0xff] }
   0x5   :  { %359 = vmatpush3.bf16.msra.mxu0 %v358_v7  ;;  %v364_v14 = vpack.c.bf16 %v47_v12, %v46_v11  ;;  %v31_v16 = vld [vmem:[%s595_s1 + $0x28] sm:$0xff]  ;;  %v49_v18 = vld [vmem:[%s595_s1 + $0xb8] sm:$0xff]  ;;  %v32_v21 = vld [vmem:[%s595_s1 + $0x30] sm:$0xff] }
   0x6   :  { %361 = vmatprep.subr.bf16.mxu0 %v360_v8  ;;  %v366_v19 = vpack.c.bf16 %v31_v16, %v30_v15  ;;  %v368_v20 = vpack.c.bf16 %v49_v18, %v48_v17  ;;  %v33_v22 = vld [vmem:[%s595_s1 + $0x38] sm:$0xff]  ;;  %v50_v23 = vld [vmem:[%s595_s1 + $0xc0] sm:$0xff]  ;;  %v51_v24 = vld [vmem:[%s595_s1 + $0xc8] sm:$0xff] }
   0x7   :  { %v58_v25 = vld [vmem:[%s595_s1 + $0x100] sm:$0xff]  ;;  %v59_v26 = vld [vmem:[%s595_s1 + $0x108] sm:$0xff]  ;;  %v370_v29 = vpack.c.bf16 %v33_v22, %v32_v21  ;;  %v60_v30 = vld [vmem:[%s595_s1 + $0x110] sm:$0xff]  ;;  %v372_v32 = vpack.c.bf16 %v51_v24, %v50_v23 }
   0x8   :  { %v388_v27 = vpack.c.bf16 %v59_v26, %v58_v25  ;;  %v15_v28 = vld [vmem:[%s596_s0 + $0x8] sm:$0xff]  ;;  %v61_v31 = vld [vmem:[%s595_s1 + $0x118] sm:$0xff]  ;;  %v34_v33 = vld [vmem:[%s595_s1 + $0x40] sm:$0xff] }
   0x9   :  { %363 = vmatpush3.bf16.msra.mxu0 %v362_v13  ;;  %146 = vmatprep.mubr.f32.mxu0 %v15_v28  ;;  %v35_v34 = vld [vmem:[%s595_s1 + $0x48] sm:$0xff]  ;;  %v392_v35 = vpack.c.bf16 %v61_v31, %v60_v30  ;;  %v16_v36 = vld [vmem:[%s596_s0 + $0x10] sm:$0xff]  ;;  %v53_v38 = vld [vmem:[%s595_s1 + $0xd8] sm:$0xff] }
   0xa   :  { %365 = vmatprep.subr.bf16.mxu0 %v364_v14  ;;  %389 = vmatprep.subr.bf16.mxu1 %v388_v27  ;;  %v52_v37 = vld [vmem:[%s595_s1 + $0xd0] sm:$0xff]  ;;  %v374_v39 = vpack.c.bf16 %v35_v34, %v34_v33  ;;  %v37_v42 = vld [vmem:[%s595_s1 + $0x58] sm:$0xff]  ;;  %v54_v43 = vld [vmem:[%s595_s1 + $0xe0] sm:$0xff] }
   0xb   :  { %391 = vmatpush3.bf16.msra.mxu1 %v388_v27  ;;  %350 = vmatprep.mubr.msk.f32.mxu1 %vm69_vm0, %v16_v36  ;;  %v376_v40 = vpack.c.bf16 %v53_v38, %v52_v37  ;;  %v36_v41 = vld [vmem:[%s595_s1 + $0x50] sm:$0xff]  ;;  %v55_v44 = vld [vmem:[%s595_s1 + $0xe8] sm:$0xff]  ;;  %v22_v46 = vld [vmem:[%s596_s0 + $0x40] sm:$0xff] }
   0xc   :  { %393 = vmatprep.subr.bf16.mxu1 %v392_v35  ;;  %v19_v45 = vld [vmem:[%s596_s0 + $0x28] sm:$0xff]  ;;  %v378_v47 = vpack.c.bf16 %v37_v42, %v36_v41  ;;  %v380_v48 = vpack.c.bf16 %v55_v44, %v54_v43  ;;  %v38_v49 = vld [vmem:[%s595_s1 + $0x60] sm:$0xff]  ;;  %v56_v51 = vld [vmem:[%s595_s1 + $0xf0] sm:$0xff] }
   0xd   :  { %367 = vmatpush3.bf16.msra.mxu0 %v366_v19  ;;  %v39_v50 = vld [vmem:[%s595_s1 + $0x68] sm:$0xff]  ;;  %v57_v52 = vld [vmem:[%s595_s1 + $0xf8] sm:$0xff]  ;;  %v40_v56 = vld [vmem:[%s595_s1 + $0x70] sm:$0xff] }
   0xe   :  { %369 = vmatprep.subr.bf16.mxu0 %v368_v20  ;;  %v25_v53 = vld [vmem:[%s596_s0 + $0x58] sm:$0xff]  ;;  %v382_v54 = vpack.c.bf16 %v39_v50, %v38_v49  ;;  %v384_v55 = vpack.c.bf16 %v57_v52, %v56_v51  ;;  %v14_v59 = vld [vmem:[%s596_s0] sm:$0xff]  ;;  %v20_v63 = vld [vmem:[%s596_s0 + $0x30] sm:$0xff] }
   0xf   :  { %395 = vmatpush3.bf16.msra.mxu1 %v392_v35  ;;  %v41_v57 = vld [vmem:[%s595_s1 + $0x78] sm:$0xff]  ;;  %v18_v60 = vld [vmem:[%s596_s0 + $0x20] sm:$0xff]  ;;  %v24_v0 = vld [vmem:[%s596_s0 + $0x50] sm:$0xff] }
  0x10   :  { %v386_v58 = vpack.c.bf16 %v41_v57, %v40_v56  ;;  %v17_v61 = vld [vmem:[%s596_s0 + $0x18] sm:$0xff]  ;;  %v23_v1 = vld [vmem:[%s596_s0 + $0x48] sm:$0xff]  ;;  %v285_v8 = vld [vmem:[%s597_s2] ss:$0 sm:$0xff] }
  0x11   :  { %371 = vmatpush3.bf16.msra.mxu0 %v370_v29  ;;  %v21_v62 = vld [vmem:[%s596_s0 + $0x38] sm:$0xff] }
  0x12   :  { %373 = vmatprep.subr.bf16.mxu0 %v372_v32  ;;  %351 = vmatmul.mubr.msk.f32.vlgmr.msra.gmra.mrb[0].mxu1 %vm69_vm0, %v19_v45 }
  0x13   :  { %353 = vmatprep.mubr.msk.f32.mxu1 %vm69_vm0, %v22_v46 }
  0x15   :  { %375 = vmatpush3.bf16.msra.mxu0 %v374_v39 }
  0x16   :  { %377 = vmatprep.subr.bf16.mxu0 %v376_v40  ;;  %354 = vmatmul.mubr.msk.f32.gmra.mrb[2].mxu1 %vm69_vm0, %v25_v53 }
  0x19   :  { %379 = vmatpush3.bf16.msra.mxu0 %v378_v47 }
  0x1a   :  { %381 = vmatprep.subr.bf16.mxu0 %v380_v48 }
  0x1d   :  { %383 = vmatpush3.bf16.msra.mxu0 %v382_v54 }
  0x1e   :  { %385 = vmatprep.subr.bf16.mxu0 %v384_v55 }
  0x21   :  { %387 = vmatpush3.bf16.msra.mxu0 %v386_v58 }
  0x24   :  { %147 = vmatmul.mubr.f32.vlgmr.msra.gmra.mrb[0].mxu0 %v14_v59 }
  0x25   :  { %151 = vmatprep.mubr.f32.mxu0 %v18_v60 }
  0x28   :  { %152 = vmatmul.mubr.f32.gmra.mrb[2].mxu0 %v17_v61 }
  0x29   :  { %156 = vmatprep.mubr.f32.mxu0 %v21_v62 }
  0x2c   :  { %157 = vmatmul.mubr.f32.gmra.mrb[4].mxu0 %v20_v63 }
  0x2d   :  { %161 = vmatprep.mubr.f32.mxu0 %v24_v0 }
  0x30   :  { %162 = vmatmul.mubr.f32.gmra.mrb[6].mxu0 %v23_v1 }
  0xe5   :  { %v352_v2 = vpop.f32.mrb[0].mxu1 }
  0xe6   :  { %v233_v3 = vpop.f32.mrb[1].mxu1 }
  0xe9   :  { %v355_v4 = vpop.f32.mrb[2].mxu1 }
  0xea   :  { %v243_v5 = vpop.f32.mrb[3].mxu1 }
  0xf7   :  { %v322_v6 = vpop.f32.mrb[0].mxu0 }
  0xf8   :  { %v323_v7 = vpop.f32.mrb[1].mxu0 }
  0xf9   :  { %v324_v9 = vadd.f32 %v323_v7, %v322_v6 }
  0xfb   :  { %v325_v10 = vpop.f32.mrb[2].mxu0  ;;  %v149_v11 = vadd.f32 %v324_v9, %v285_v8 }
  0xfc   :  { %v326_v12 = vpop.f32.mrb[3].mxu0 }
  0xfd   :  { %v327_v13 = vadd.f32 %v326_v12, %v325_v10  ;;  %v234_v14 = vadd.f32 %v233_v3, %v149_v11 }
  0xff   :  { %v154_v15 = vadd.f32 %v327_v13, %v285_v8  ;;  %v252_v16 = vsub.f32 0.0, %v234_v14  ;;  %v328_v17 = vpop.f32.mrb[4].mxu0 }
 0x100   :  { %v329_v18 = vpop.f32.mrb[5].mxu0 }
 0x101   :  { %v239_v19 = vadd.f32 %v352_v2, %v154_v15  ;;  %v256_v20 = vmul.f32 1.442695, %v252_v16  ;;  %v330_v21 = vadd.f32 %v329_v18, %v328_v17 }
 0x103   :  { %v253_v22 = vsub.f32 0.0, %v239_v19  ;;  %396 = vpow2.f32 %v256_v20  ;;  %v331_v23 = vpop.f32.mrb[6].mxu0  ;;  %v159_v24 = vadd.f32 %v330_v21, %v285_v8 }
 0x104   :  { %v332_v25 = vpop.f32.mrb[7].mxu0 }
 0x105   :  { %v258_v26 = vmul.f32 1.442695, %v253_v22  ;;  %v333_v27 = vadd.f32 %v332_v25, %v331_v23  ;;  %v244_v28 = vadd.f32 %v243_v5, %v159_v24 }
 0x107   :  { %398 = vpow2.f32 %v258_v26  ;;  %v164_v29 = vadd.f32 %v333_v27, %v285_v8  ;;  %v254_v30 = vsub.f32 0.0, %v244_v28 }
 0x109   :  { %v249_v31 = vadd.f32 %v355_v4, %v164_v29  ;;  %v260_v32 = vmul.f32 1.442695, %v254_v30 }
 0x10b   :  { %v255_v33 = vsub.f32 0.0, %v249_v31  ;;  %400 = vpow2.f32 %v260_v32 }
 0x10d   :  { %v397_v34 = vpop.eup %396  ;;  %v262_v35 = vmul.f32 1.442695, %v255_v33 }
 0x10e   :  { %v264_v36 = vadd.f32 1.0, %v397_v34 }
 0x10f   :  { %402 = vpow2.f32 %v262_v35 }
 0x110   :  { %404 = vrcp.f32 %v264_v36 }
 0x111   :  { %v399_v37 = vpop.eup %398 }
 0x112   :  { %v265_v38 = vadd.f32 1.0, %v399_v37 }
 0x114   :  { %406 = vrcp.f32 %v265_v38 }
 0x115   :  { %v401_v39 = vpop.eup %400 }
 0x116   :  { %v266_v40 = vadd.f32 1.0, %v401_v39 }
 0x118   :  { %408 = vrcp.f32 %v266_v40 }
 0x119   :  { %v403_v41 = vpop.eup %402 }
 0x11a   :  { %v405_v42 = vpop.eup %404  ;;  %v267_v43 = vadd.f32 1.0, %v403_v41 }
 0x11b   :  { %v272_v44 = vmul.f32 %v405_v42, %v234_v14 }
 0x11c   :  { %410 = vrcp.f32 %v267_v43 }
 0x11d   :  { %277 = vst.msk [vmem:[%s598_s3] sm:$0xff] %vm276_vm1, %v272_v44 }
 0x11e   :  { %v407_v45 = vpop.eup %406 }
 0x11f   :  { %v273_v46 = vmul.f32 %v407_v45, %v239_v19 }
 0x121   :  { %278 = vst.msk [vmem:[%s598_s3 + $0x8] sm:$0xff] %vm276_vm1, %v273_v46 }
 0x122   :  { %v409_v47 = vpop.eup %408 }
 0x123   :  { %v274_v48 = vmul.f32 %v409_v47, %v244_v28 }
 0x125   :  { %279 = vst.msk [vmem:[%s598_s3 + $0x10] sm:$0xff] %vm276_vm1, %v274_v48 }
 0x126   :  { %v411_v49 = vpop.eup %410 }
 0x127   :  { %v275_v50 = vmul.f32 %v411_v49, %v249_v31 }
 0x129   :  { %280 = vst.msk [vmem:[%s598_s3 + $0x18] sm:$0xff] %vm276_vm1, %v275_v50 }

// kernel: image_regressor_forward.8
= control target key start
LH: loop header
LB: loop body
LE: loop exit
PB: predicated region body
PF: predicated region fallthrough
CT: control target
= control target key end

     0   :  { %vm497_vm0 = vmmov 0   ;;  %vm98_vm1 = vcmask 523264   ;;  %s756_s1 = inlined_call_operand.vmem [shape: f32[576,128], index: 1, kind: input, shape index: {}]   ;;  %s757_s0 = inlined_call_operand.vmem [shape: f32[8,576], index: 0, kind: input, shape index: {}]   ;;  %s758_s2 = inlined_call_operand.vmem [shape: f32[1,128], index: 2, kind: input, shape index: {}]   ;;  %s759_s3 = inlined_call_operand.vmem [shape: f32[8,128], index: 3, kind: output, shape index: {}]  }
   0x1   :  { %v35_v0 = vld [vmem:[%s756_s1 + $0x80] sm:$0xff]  ;;  %v36_v1 = vld [vmem:[%s756_s1 + $0x88] sm:$0xff]  ;;  %v37_v11 = vld [vmem:[%s756_s1 + $0x90] sm:$0xff] }
   0x2   :  { %v19_v2 = vld [vmem:[%s756_s1] sm:$0xff]  ;;  %v417_v3 = vpack.c.bf16 %v36_v1, %v35_v0  ;;  %v20_v4 = vld [vmem:[%s756_s1 + $0x8] sm:$0xff]  ;;  %v38_v13 = vld [vmem:[%s756_s1 + $0x98] sm:$0xff] }
   0x3   :  { %v67_v5 = vld [vmem:[%s756_s1 + $0x180] sm:$0xff]  ;;  %v68_v6 = vld [vmem:[%s756_s1 + $0x188] sm:$0xff]  ;;  %v419_v7 = vpack.c.bf16 %v20_v4, %v19_v2  ;;  %v21_v14 = vld [vmem:[%s756_s1 + $0x10] sm:$0xff]  ;;  %v421_v16 = vpack.c.bf16 %v38_v13, %v37_v11 }
   0x4   :  { %v449_v8 = vpack.c.bf16 %v68_v6, %v67_v5  ;;  %v51_v9 = vld [vmem:[%s756_s1 + $0x100] sm:$0xff]  ;;  %v52_v10 = vld [vmem:[%s756_s1 + $0x108] sm:$0xff]  ;;  %418 = vmatprep.subr.bf16.mxu0 %v417_v3  ;;  %v22_v15 = vld [vmem:[%s756_s1 + $0x18] sm:$0xff] }
   0x5   :  { %v451_v12 = vpack.c.bf16 %v52_v10, %v51_v9  ;;  %420 = vmatpush3.bf16.msra.mxu0 %v419_v7  ;;  %v423_v17 = vpack.c.bf16 %v22_v15, %v21_v14  ;;  %v69_v18 = vld [vmem:[%s756_s1 + $0x190] sm:$0xff]  ;;  %v70_v19 = vld [vmem:[%s756_s1 + $0x198] sm:$0xff]  ;;  %v39_v23 = vld [vmem:[%s756_s1 + $0xa0] sm:$0xff] }
   0x6   :  { %450 = vmatprep.subr.bf16.mxu1 %v449_v8  ;;  %v53_v20 = vld [vmem:[%s756_s1 + $0x110] sm:$0xff]  ;;  %v453_v21 = vpack.c.bf16 %v70_v19, %v69_v18  ;;  %v54_v22 = vld [vmem:[%s756_s1 + $0x118] sm:$0xff]  ;;  %v40_v24 = vld [vmem:[%s756_s1 + $0xa8] sm:$0xff]  ;;  %422 = vmatprep.subr.bf16.mxu0 %v421_v16 }
   0x7   :  { %452 = vmatpush3.bf16.msra.mxu1 %v451_v12  ;;  %v455_v25 = vpack.c.bf16 %v54_v22, %v53_v20  ;;  %v425_v26 = vpack.c.bf16 %v40_v24, %v39_v23  ;;  %v23_v27 = vld [vmem:[%s756_s1 + $0x20] sm:$0xff]  ;;  %v24_v28 = vld [vmem:[%s756_s1 + $0x28] sm:$0xff]  ;;  %v41_v35 = vld [vmem:[%s756_s1 + $0xb0] sm:$0xff] }
   0x8   :  { %v71_v29 = vld [vmem:[%s756_s1 + $0x1a0] sm:$0xff]  ;;  %454 = vmatprep.subr.bf16.mxu1 %v453_v21  ;;  %v72_v30 = vld [vmem:[%s756_s1 + $0x1a8] sm:$0xff]  ;;  %v427_v33 = vpack.c.bf16 %v24_v28, %v23_v27  ;;  %v42_v36 = vld [vmem:[%s756_s1 + $0xb8] sm:$0xff] }
   0x9   :  { %v55_v31 = vld [vmem:[%s756_s1 + $0x120] sm:$0xff]  ;;  %v56_v32 = vld [vmem:[%s756_s1 + $0x128] sm:$0xff]  ;;  %424 = vmatpush3.bf16.msra.mxu0 %v423_v17  ;;  %v457_v34 = vpack.c.bf16 %v72_v30, %v71_v29  ;;  %v25_v37 = vld [vmem:[%s756_s1 + $0x30] sm:$0xff]  ;;  %v429_v39 = vpack.c.bf16 %v42_v36, %v41_v35 }
   0xa   :  { %426 = vmatprep.subr.bf16.mxu0 %v425_v26  ;;  %v459_v38 = vpack.c.bf16 %v56_v32, %v55_v31  ;;  %v26_v40 = vld [vmem:[%s756_s1 + $0x38] sm:$0xff]  ;;  %v73_v41 = vld [vmem:[%s756_s1 + $0x1b0] sm:$0xff]  ;;  %v43_v46 = vld [vmem:[%s756_s1 + $0xc0] sm:$0xff] }
   0xb   :  { %456 = vmatpush3.bf16.msra.mxu1 %v455_v25  ;;  %v74_v42 = vld [vmem:[%s756_s1 + $0x1b8] sm:$0xff]  ;;  %v57_v44 = vld [vmem:[%s756_s1 + $0x130] sm:$0xff]  ;;  %v44_v47 = vld [vmem:[%s756_s1 + $0xc8] sm:$0xff]  ;;  %v431_v48 = vpack.c.bf16 %v26_v40, %v25_v37 }
   0xc   :  { %458 = vmatprep.subr.bf16.mxu1 %v457_v34  ;;  %v461_v43 = vpack.c.bf16 %v74_v42, %v73_v41  ;;  %v58_v45 = vld [vmem:[%s756_s1 + $0x138] sm:$0xff]  ;;  %v75_v49 = vld [vmem:[%s756_s1 + $0x1c0] sm:$0xff]  ;;  %v76_v50 = vld [vmem:[%s756_s1 + $0x1c8] sm:$0xff]  ;;  %v433_v52 = vpack.c.bf16 %v44_v47, %v43_v46 }
   0xd   :  { %428 = vmatpush3.bf16.msra.mxu0 %v427_v33  ;;  %v463_v51 = vpack.c.bf16 %v58_v45, %v57_v44  ;;  %v27_v53 = vld [vmem:[%s756_s1 + $0x40] sm:$0xff]  ;;  %v28_v54 = vld [vmem:[%s756_s1 + $0x48] sm:$0xff]  ;;  %v465_v56 = vpack.c.bf16 %v76_v50, %v75_v49  ;;  %v45_v58 = vld [vmem:[%s756_s1 + $0xd0] sm:$0xff]  ;;  %v498_v45 = vmov 0.0  }
   0xe   :  { %430 = vmatprep.subr.bf16.mxu0 %v429_v39  ;;  %v59_v55 = vld [vmem:[%s756_s1 + $0x140] sm:$0xff]  ;;  %v60_v57 = vld [vmem:[%s756_s1 + $0x148] sm:$0xff]  ;;  %v46_v59 = vld [vmem:[%s756_s1 + $0xd8] sm:$0xff]  ;;  %v435_v62 = vpack.c.bf16 %v28_v54, %v27_v53 }
   0xf   :  { %460 = vmatpush3.bf16.msra.mxu1 %v459_v38  ;;  %v77_v60 = vld [vmem:[%s756_s1 + $0x1d0] sm:$0xff]  ;;  %v78_v61 = vld [vmem:[%s756_s1 + $0x1d8] sm:$0xff]  ;;  %v467_v63 = vpack.c.bf16 %v60_v57, %v59_v55  ;;  %v437_v0 = vpack.c.bf16 %v46_v59, %v45_v58  ;;  %v47_v6 = vld [vmem:[%s756_s1 + $0xe0] sm:$0xff]  ;;  %v496_v38 = vmov 0.0|0.0  }
  0x10   :  { %462 = vmatprep.subr.bf16.mxu1 %v461_v43  ;;  %v29_v1 = vld [vmem:[%s756_s1 + $0x50] sm:$0xff]  ;;  %v30_v2 = vld [vmem:[%s756_s1 + $0x58] sm:$0xff]  ;;  %v469_v4 = vpack.c.bf16 %v78_v61, %v77_v60  ;;  %v48_v7 = vld [vmem:[%s756_s1 + $0xe8] sm:$0xff] }
  0x11   :  { %432 = vmatpush3.bf16.msra.mxu0 %v431_v48  ;;  %v61_v3 = vld [vmem:[%s756_s1 + $0x150] sm:$0xff]  ;;  %v62_v5 = vld [vmem:[%s756_s1 + $0x158] sm:$0xff]  ;;  %v79_v8 = vld [vmem:[%s756_s1 + $0x1e0] sm:$0xff]  ;;  %v439_v10 = vpack.c.bf16 %v30_v2, %v29_v1  ;;  %v441_v14 = vpack.c.bf16 %v48_v7, %v47_v6 }
  0x12   :  { %434 = vmatprep.subr.bf16.mxu0 %v433_v52  ;;  %v80_v9 = vld [vmem:[%s756_s1 + $0x1e8] sm:$0xff]  ;;  %v31_v11 = vld [vmem:[%s756_s1 + $0x60] sm:$0xff]  ;;  %v471_v13 = vpack.c.bf16 %v62_v5, %v61_v3  ;;  %v49_v19 = vld [vmem:[%s756_s1 + $0xf0] sm:$0xff] }
  0x13   :  { %464 = vmatpush3.bf16.msra.mxu1 %v463_v51  ;;  %v15_v12 = vld [vmem:[%s757_s0 + $0x8] sm:$0xff]  ;;  %v63_v16 = vld [vmem:[%s756_s1 + $0x160] sm:$0xff]  ;;  %v473_v18 = vpack.c.bf16 %v80_v9, %v79_v8  ;;  %v50_v20 = vld [vmem:[%s756_s1 + $0xf8] sm:$0xff] }
  0x14   :  { %466 = vmatprep.subr.bf16.mxu1 %v465_v56  ;;  %v32_v15 = vld [vmem:[%s756_s1 + $0x68] sm:$0xff]  ;;  %166 = vmatprep.mubr.f32.mxu0 %v15_v12  ;;  %v17_v21 = vld [vmem:[%s757_s0 + $0x18] sm:$0xff]  ;;  %v81_v22 = vld [vmem:[%s756_s1 + $0x1f0] sm:$0xff]  ;;  %v445_v26 = vpack.c.bf16 %v50_v20, %v49_v19 }
  0x15   :  { %436 = vmatpush3.bf16.msra.mxu0 %v435_v62  ;;  %v64_v17 = vld [vmem:[%s756_s1 + $0x168] sm:$0xff]  ;;  %v82_v23 = vld [vmem:[%s756_s1 + $0x1f8] sm:$0xff]  ;;  %236 = vmatprep.mubr.f32.mxu1 %v17_v21  ;;  %v443_v24 = vpack.c.bf16 %v32_v15, %v31_v11  ;;  %v33_v27 = vld [vmem:[%s756_s1 + $0x70] sm:$0xff] }
  0x16   :  { %438 = vmatprep.subr.bf16.mxu0 %v437_v0  ;;  %v475_v25 = vpack.c.bf16 %v64_v17, %v63_v16  ;;  %v34_v28 = vld [vmem:[%s756_s1 + $0x78] sm:$0xff]  ;;  %v477_v29 = vpack.c.bf16 %v82_v23, %v81_v22  ;;  %v65_v30 = vld [vmem:[%s756_s1 + $0x170] sm:$0xff]  ;;  %v83_v34 = vld [vmem:[%s756_s1 + $0x200] sm:$0xff] }
  0x17   :  { %468 = vmatpush3.bf16.msra.mxu1 %v467_v63  ;;  %v66_v31 = vld [vmem:[%s756_s1 + $0x178] sm:$0xff]  ;;  %v447_v32 = vpack.c.bf16 %v34_v28, %v33_v27  ;;  %v84_v35 = vld [vmem:[%s756_s1 + $0x208] sm:$0xff]  ;;  %v14_v36 = vld [vmem:[%s757_s0] sm:$0xff] }
  0x18   :  { %470 = vmatprep.subr.bf16.mxu1 %v469_v4  ;;  %v479_v33 = vpack.c.bf16 %v66_v31, %v65_v30  ;;  %v482_v37 = vpack.c.bf16 %v84_v35, %v83_v34  ;;  %v16_v39 = vld [vmem:[%s757_s0 + $0x10] sm:$0xff]  ;;  %v86_v41 = vld [vmem:[%s756_s1 + $0x218] sm:$0xff]  ;;  %v87_v43 = vld [vmem:[%s756_s1 + $0x220] sm:$0xff] }
  0x19   :  { %440 = vmatpush3.bf16.msra.mxu0 %v439_v10  ;;  %v85_v40 = vld [vmem:[%s756_s1 + $0x210] sm:$0xff]  ;;  %v88_v44 = vld [vmem:[%s756_s1 + $0x228] sm:$0xff]  ;;  %v90_v48 = vld [vmem:[%s756_s1 + $0x238] sm:$0xff] }
  0x1a   :  { %442 = vmatprep.subr.bf16.mxu0 %v441_v14  ;;  %v485_v42 = vpack.c.bf16 %v86_v41, %v85_v40  ;;  %v488_v46 = vpack.c.bf16 %v88_v44, %v87_v43  ;;  %v89_v47 = vld [vmem:[%s756_s1 + $0x230] sm:$0xff]  ;;  %v18_v50 = vld [vmem:[%s757_s0 + $0x20] sm:$0xff] }
  0x1b   :  { %472 = vmatpush3.bf16.msra.mxu1 %v471_v13  ;;  %v491_v49 = vpack.c.bf16 %v90_v48, %v89_v47  ;;  %v317_v52 = vld [vmem:[%s758_s2] ss:$0 sm:$0xff] }
  0x1c   :  { %474 = vmatprep.subr.bf16.mxu1 %v473_v18 }
  0x1d   :  { %444 = vmatpush3.bf16.msra.mxu0 %v443_v24 }
  0x1e   :  { %446 = vmatprep.subr.bf16.mxu0 %v445_v26 }
  0x1f   :  { %476 = vmatpush3.bf16.msra.mxu1 %v475_v25 }
  0x20   :  { %478 = vmatprep.subr.bf16.mxu1 %v477_v29 }
  0x21   :  { %448 = vmatpush3.bf16.msra.mxu0 %v447_v32 }
  0x22   :  { %481 = vmatprep.subr.bf16.mxu0 %v496_v38 }
  0x23   :  { %480 = vmatpush3.bf16.msra.mxu1 %v479_v33 }
  0x24   :  { %167 = vmatmul.mubr.f32.vlgmr.msra.gmra.mrb[0].mxu0 %v14_v36 }
  0x25   :  { %483 = vmatpush3.bf16.msra.mxu0 %v482_v37  ;;  %414 = vmatprep.mubr.msk.f32.mxu0 %vm497_vm0, %v498_v45 }
  0x26   :  { %237 = vmatmul.mubr.f32.vlgmr.msra.gmra.mrb[0].mxu1 %v16_v39  ;;  %484 = vmatprep.subr.bf16.mxu0 %v496_v38 }
  0x29   :  { %486 = vmatpush3.bf16.msra.mxu0 %v485_v42 }
  0x2a   :  { %487 = vmatprep.subr.bf16.mxu0 %v496_v38 }
  0x2d   :  { %489 = vmatpush3.bf16.msra.mxu0 %v488_v46 }
  0x2e   :  { %490 = vmatprep.subr.bf16.mxu0 %v496_v38 }
  0x31   :  { %492 = vmatpush3.bf16.msra.mxu0 %v491_v49 }
  0x34   :  { %415 = vmatmul.mubr.msk.f32.vlgmr.msra.gmra.mrb[2].mxu0 %vm98_vm1, %v18_v50 }
  0xf7   :  { %v351_v51 = vpop.f32.mrb[0].mxu0 }
  0xf8   :  { %v352_v53 = vpop.f32.mrb[1].mxu0 }
  0xf9   :  { %v386_v54 = vpop.f32.mrb[0].mxu1  ;;  %v353_v55 = vadd.f32 %v352_v53, %v351_v51 }
  0xfa   :  { %v387_v56 = vpop.f32.mrb[1].mxu1 }
  0xfb   :  { %v388_v57 = vadd.f32 %v387_v56, %v386_v54  ;;  %v169_v58 = vadd.f32 %v353_v55, %v317_v52 }
  0xfd   :  { %v239_v59 = vadd.f32 %v388_v57, %v169_v58 }
 0x107   :  { %v308_v60 = vpop.f32.mrb[2].mxu0 }
 0x108   :  { %v309_v61 = vadd.f32 %v308_v60, %v239_v59  ;;  %v416_v62 = vpop.f32.mrb[3].mxu0 }
 0x10a   :  { %312 = vst [vmem:[%s759_s3] sm:$0xff] %v309_v61 }

// kernel: image_regressor_forward.9
= control target key start
LH: loop header
LB: loop body
LE: loop exit
PB: predicated region body
PF: predicated region fallthrough
CT: control target
= control target key end

     0   :  { %v763_v47 = vmov 1983009808   ;;  %v104_v49 = vlaneseq  ;;  %s1108_s0 = inlined_call_operand.vmem [shape: f32[2,512], index: 0, kind: input, shape index: {}]   ;;  %s1109_s1 = inlined_call_operand.vmem [shape: f32[512,128], index: 1, kind: input, shape index: {}]   ;;  %s1110_s2 = inlined_call_operand.vmem [shape: f32[1,128], index: 2, kind: input, shape index: {}]   ;;  %s1111_s3 = inlined_call_operand.vmem [shape: f32[128,64], index: 3, kind: input, shape index: {}]   ;;  %s1112_s4 = inlined_call_operand.vmem [shape: f32[1,64], index: 4, kind: input, shape index: {}]   ;;  %s1113_s5 = inlined_call_operand.vmem [shape: f32[64,4], index: 5, kind: input, shape index: {}]   ;;  %s1114_s6 = inlined_call_operand.vmem [shape: f32[1,4], index: 6, kind: input, shape index: {}]   ;;  %s1115_s7 = inlined_call_operand.hbm [shape: f32[2,4], index: 7, kind: output, shape index: {}]  }
   0x1   :  { %v44_v0 = vld [vmem:[%s1109_s1 + $0x80] sm:$0xff]  ;;  %v45_v1 = vld [vmem:[%s1109_s1 + $0x88] sm:$0xff]  ;;  %v46_v11 = vld [vmem:[%s1109_s1 + $0x90] sm:$0xff]  ;;  %v102_v48 = vunpack.c.l.s4 %v763_v47 }
   0x2   :  { %v28_v2 = vld [vmem:[%s1109_s1] sm:$0xff]  ;;  %v625_v3 = vpack.c.bf16 %v45_v1, %v44_v0  ;;  %v29_v4 = vld [vmem:[%s1109_s1 + $0x8] sm:$0xff]  ;;  %v47_v13 = vld [vmem:[%s1109_s1 + $0x98] sm:$0xff]  ;;  %v105_v0 = vshrl.u32 %v104_v49, 7 }
   0x3   :  { %v76_v5 = vld [vmem:[%s1109_s1 + $0x180] sm:$0xff]  ;;  %v77_v6 = vld [vmem:[%s1109_s1 + $0x188] sm:$0xff]  ;;  %v627_v7 = vpack.c.bf16 %v29_v4, %v28_v2  ;;  %v30_v14 = vld [vmem:[%s1109_s1 + $0x10] sm:$0xff]  ;;  %v629_v16 = vpack.c.bf16 %v47_v13, %v46_v11  ;;  %v103_v63 = vunpack.c.0.s8 %v102_v48 }
   0x4   :  { %v657_v8 = vpack.c.bf16 %v77_v6, %v76_v5  ;;  %v60_v9 = vld [vmem:[%s1109_s1 + $0x100] sm:$0xff]  ;;  %v61_v10 = vld [vmem:[%s1109_s1 + $0x108] sm:$0xff]  ;;  %626 = vmatprep.subr.bf16.mxu0 %v625_v3  ;;  %v31_v15 = vld [vmem:[%s1109_s1 + $0x18] sm:$0xff] }
   0x5   :  { %v659_v12 = vpack.c.bf16 %v61_v10, %v60_v9  ;;  %628 = vmatpush3.bf16.msra.mxu0 %v627_v7  ;;  %v631_v17 = vpack.c.bf16 %v31_v15, %v30_v14  ;;  %v78_v18 = vld [vmem:[%s1109_s1 + $0x190] sm:$0xff]  ;;  %v79_v19 = vld [vmem:[%s1109_s1 + $0x198] sm:$0xff]  ;;  %v48_v23 = vld [vmem:[%s1109_s1 + $0xa0] sm:$0xff]  ;;  %v106_v13 = vsub.s32 %v103_v63, %v105_v0 }
   0x6   :  { %658 = vmatprep.subr.bf16.mxu1 %v657_v8  ;;  %v62_v20 = vld [vmem:[%s1109_s1 + $0x110] sm:$0xff]  ;;  %v661_v21 = vpack.c.bf16 %v79_v19, %v78_v18  ;;  %v63_v22 = vld [vmem:[%s1109_s1 + $0x118] sm:$0xff]  ;;  %v49_v24 = vld [vmem:[%s1109_s1 + $0xa8] sm:$0xff]  ;;  %630 = vmatprep.subr.bf16.mxu0 %v629_v16 }
   0x7   :  { %660 = vmatpush3.bf16.msra.mxu1 %v659_v12  ;;  %v663_v25 = vpack.c.bf16 %v63_v22, %v62_v20  ;;  %v633_v26 = vpack.c.bf16 %v49_v24, %v48_v23  ;;  %v32_v27 = vld [vmem:[%s1109_s1 + $0x20] sm:$0xff]  ;;  %v33_v28 = vld [vmem:[%s1109_s1 + $0x28] sm:$0xff]  ;;  %v50_v35 = vld [vmem:[%s1109_s1 + $0xb0] sm:$0xff] }
   0x8   :  { %v80_v29 = vld [vmem:[%s1109_s1 + $0x1a0] sm:$0xff]  ;;  %662 = vmatprep.subr.bf16.mxu1 %v661_v21  ;;  %v81_v30 = vld [vmem:[%s1109_s1 + $0x1a8] sm:$0xff]  ;;  %v635_v33 = vpack.c.bf16 %v33_v28, %v32_v27  ;;  %v51_v36 = vld [vmem:[%s1109_s1 + $0xb8] sm:$0xff] }
   0x9   :  { %v64_v31 = vld [vmem:[%s1109_s1 + $0x120] sm:$0xff]  ;;  %v65_v32 = vld [vmem:[%s1109_s1 + $0x128] sm:$0xff]  ;;  %632 = vmatpush3.bf16.msra.mxu0 %v631_v17  ;;  %v665_v34 = vpack.c.bf16 %v81_v30, %v80_v29  ;;  %v34_v37 = vld [vmem:[%s1109_s1 + $0x30] sm:$0xff]  ;;  %v637_v39 = vpack.c.bf16 %v51_v36, %v50_v35 }
   0xa   :  { %634 = vmatprep.subr.bf16.mxu0 %v633_v26  ;;  %v667_v38 = vpack.c.bf16 %v65_v32, %v64_v31  ;;  %v35_v40 = vld [vmem:[%s1109_s1 + $0x38] sm:$0xff]  ;;  %v82_v41 = vld [vmem:[%s1109_s1 + $0x1b0] sm:$0xff]  ;;  %v52_v46 = vld [vmem:[%s1109_s1 + $0xc0] sm:$0xff] }
   0xb   :  { %664 = vmatpush3.bf16.msra.mxu1 %v663_v25  ;;  %v83_v42 = vld [vmem:[%s1109_s1 + $0x1b8] sm:$0xff]  ;;  %v66_v44 = vld [vmem:[%s1109_s1 + $0x130] sm:$0xff]  ;;  %v53_v50 = vld [vmem:[%s1109_s1 + $0xc8] sm:$0xff]  ;;  %v639_v51 = vpack.c.bf16 %v35_v40, %v34_v37 }
   0xc   :  { %666 = vmatprep.subr.bf16.mxu1 %v665_v34  ;;  %v669_v43 = vpack.c.bf16 %v83_v42, %v82_v41  ;;  %v67_v45 = vld [vmem:[%s1109_s1 + $0x138] sm:$0xff]  ;;  %v84_v52 = vld [vmem:[%s1109_s1 + $0x1c0] sm:$0xff]  ;;  %v85_v53 = vld [vmem:[%s1109_s1 + $0x1c8] sm:$0xff]  ;;  %v641_v55 = vpack.c.bf16 %v53_v50, %v52_v46 }
   0xd   :  { %636 = vmatpush3.bf16.msra.mxu0 %v635_v33  ;;  %v671_v54 = vpack.c.bf16 %v67_v45, %v66_v44  ;;  %v36_v56 = vld [vmem:[%s1109_s1 + $0x40] sm:$0xff]  ;;  %v37_v57 = vld [vmem:[%s1109_s1 + $0x48] sm:$0xff]  ;;  %v673_v59 = vpack.c.bf16 %v85_v53, %v84_v52  ;;  %v54_v61 = vld [vmem:[%s1109_s1 + $0xd0] sm:$0xff] }
   0xe   :  { %638 = vmatprep.subr.bf16.mxu0 %v637_v39  ;;  %v68_v58 = vld [vmem:[%s1109_s1 + $0x140] sm:$0xff]  ;;  %v69_v60 = vld [vmem:[%s1109_s1 + $0x148] sm:$0xff]  ;;  %v55_v62 = vld [vmem:[%s1109_s1 + $0xd8] sm:$0xff]  ;;  %v643_v3 = vpack.c.bf16 %v37_v57, %v36_v56 }
   0xf   :  { %668 = vmatpush3.bf16.msra.mxu1 %v667_v38  ;;  %v86_v1 = vld [vmem:[%s1109_s1 + $0x1d0] sm:$0xff]  ;;  %v87_v2 = vld [vmem:[%s1109_s1 + $0x1d8] sm:$0xff]  ;;  %v675_v4 = vpack.c.bf16 %v69_v60, %v68_v58  ;;  %v645_v5 = vpack.c.bf16 %v55_v62, %v54_v61  ;;  %v56_v11 = vld [vmem:[%s1109_s1 + $0xe0] sm:$0xff] }
  0x10   :  { %670 = vmatprep.subr.bf16.mxu1 %v669_v43  ;;  %v38_v6 = vld [vmem:[%s1109_s1 + $0x50] sm:$0xff]  ;;  %v39_v7 = vld [vmem:[%s1109_s1 + $0x58] sm:$0xff]  ;;  %v677_v9 = vpack.c.bf16 %v87_v2, %v86_v1  ;;  %v57_v12 = vld [vmem:[%s1109_s1 + $0xe8] sm:$0xff] }
  0x11   :  { %640 = vmatpush3.bf16.msra.mxu0 %v639_v51  ;;  %v70_v8 = vld [vmem:[%s1109_s1 + $0x150] sm:$0xff]  ;;  %v71_v10 = vld [vmem:[%s1109_s1 + $0x158] sm:$0xff]  ;;  %v88_v14 = vld [vmem:[%s1109_s1 + $0x1e0] sm:$0xff]  ;;  %v647_v16 = vpack.c.bf16 %v39_v7, %v38_v6  ;;  %v649_v20 = vpack.c.bf16 %v57_v12, %v56_v11 }
  0x12   :  { %642 = vmatprep.subr.bf16.mxu0 %v641_v55  ;;  %v89_v15 = vld [vmem:[%s1109_s1 + $0x1e8] sm:$0xff]  ;;  %v40_v17 = vld [vmem:[%s1109_s1 + $0x60] sm:$0xff]  ;;  %v679_v19 = vpack.c.bf16 %v71_v10, %v70_v8 }
  0x13   :  { %672 = vmatpush3.bf16.msra.mxu1 %v671_v54  ;;  %v41_v18 = vld [vmem:[%s1109_s1 + $0x68] sm:$0xff]  ;;  %v72_v21 = vld [vmem:[%s1109_s1 + $0x160] sm:$0xff] }
  0x14   :  { %674 = vmatprep.subr.bf16.mxu1 %v673_v59  ;;  %v27_v22 = vld [vmem:[%s1108_s0] sm:$0xff] }
  0x15   :  { %644 = vmatpush3.bf16.msra.mxu0 %v643_v3 }
  0x16   :  { %646 = vmatprep.subr.bf16.mxu0 %v645_v5 }
  0x17   :  { %676 = vmatpush3.bf16.msra.mxu1 %v675_v4 }
  0x18   :  { %12 = vsyncpa [#allocation3], 0  ;;  %678 = vmatprep.subr.bf16.mxu1 %v677_v9  ;;  %v681_v23 = vpack.c.bf16 %v89_v15, %v88_v14  ;;  %v73_v24 = vld [vmem:[%s1109_s1 + $0x168] sm:$0xff]  ;;  %v58_v25 = vld [vmem:[%s1109_s1 + $0xf0] sm:$0xff]  ;;  %v107_v27 = vrot.slane %v27_v22, %v106_v13  ;;  %v100_v28 = vcombine.high %v27_v22, %v27_v22  ;;  %v651_v31 = vpack.c.bf16 %v41_v18, %v40_v17  ;;  %s767_s16 = smov [#allocation2]  }
  0x19   :  { %v59_v26 = vld [vmem:[%s1109_s1 + $0xf8] sm:$0xff]  ;;  %v90_v29 = vld [vmem:[%s1109_s1 + $0x1f0] sm:$0xff]  ;;  %648 = vmatpush3.bf16.msra.mxu0 %v647_v16  ;;  %v683_v34 = vpack.c.bf16 %v73_v24, %v72_v21  ;;  %v267_v44 = vld [vmem:[%s1111_s3] sm:$0xff]  ;;  %v764_v47 = vmov 0.0|0.0   ;;  %vm765_vm0 = vmmov 0   ;;  %v766_v5 = vmov 0.0  }
  0x1a   :  { %v91_v30 = vld [vmem:[%s1109_s1 + $0x1f8] sm:$0xff]  ;;  %v115_v32 = vcombine.high %v107_v27, %v107_v27  ;;  %v114_v33 = vrot.slane %v100_v28, %v106_v13  ;;  %650 = vmatprep.subr.bf16.mxu0 %v649_v20  ;;  %v653_v35 = vpack.c.bf16 %v59_v26, %v58_v25  ;;  %v42_v36 = vld [vmem:[%s1109_s1 + $0x70] sm:$0xff]  ;;  %v268_v45 = vld [vmem:[%s1111_s3 + $0x8] sm:$0xff]  ;;  %vm381_vm1 = vcmask 523264   ;;  %s463_s17 = sshll.u32 %s767_s16, 4  ;;  %s464_s17 = int_to_ptr.vmem [resolvable:$true] %s463_s17 }
  0x1b   :  { %680 = vmatpush3.bf16.msra.mxu1 %v679_v19  ;;  %v43_v37 = vld [vmem:[%s1109_s1 + $0x78] sm:$0xff]  ;;  %v685_v38 = vpack.c.bf16 %v91_v30, %v90_v29  ;;  %v74_v39 = vld [vmem:[%s1109_s1 + $0x170] sm:$0xff]  ;;  %v690_v46 = vpack.c.bf16 %v268_v45, %v267_v44  ;;  %v271_v51 = vld [vmem:[%s1111_s3 + $0x20] sm:$0xff]  ;;  %vm455_vm2 = vcmask 25600   ;;  %p744_p1 = scmp.lt.s32.totalorder %s464_s17, %s464_s17 }
  0x1c   :  { %682 = vmatprep.subr.bf16.mxu1 %v681_v23  ;;  %v75_v40 = vld [vmem:[%s1109_s1 + $0x178] sm:$0xff]  ;;  %185 = vmatprep.mubr.f32.mxu0 %v115_v32  ;;  %v116_v41 = vcombine.high %v114_v33, %v114_v33  ;;  %v655_v42 = vpack.c.bf16 %v43_v37, %v42_v36  ;;  %v269_v48 = vld [vmem:[%s1111_s3 + $0x10] sm:$0xff]  ;;  %v272_v52 = vld [vmem:[%s1111_s3 + $0x28] sm:$0xff] }
  0x1d   :  { %652 = vmatpush3.bf16.msra.mxu0 %v651_v31  ;;  %v687_v43 = vpack.c.bf16 %v75_v40, %v74_v39  ;;  %v270_v49 = vld [vmem:[%s1111_s3 + $0x18] sm:$0xff]  ;;  %v696_v53 = vpack.c.bf16 %v272_v52, %v271_v51  ;;  %v273_v54 = vld [vmem:[%s1111_s3 + $0x30] sm:$0xff]  ;;  %v275_v57 = vld [vmem:[%s1111_s3 + $0x40] sm:$0xff] }
  0x1e   :  { %255 = vmatprep.mubr.f32.mxu1 %v116_v41  ;;  %654 = vmatprep.subr.bf16.mxu0 %v653_v35  ;;  %v693_v50 = vpack.c.bf16 %v270_v49, %v269_v48  ;;  %v274_v55 = vld [vmem:[%s1111_s3 + $0x38] sm:$0xff]  ;;  %v276_v58 = vld [vmem:[%s1111_s3 + $0x48] sm:$0xff]  ;;  %v277_v60 = vld [vmem:[%s1111_s3 + $0x50] sm:$0xff] }
  0x1f   :  { %684 = vmatpush3.bf16.msra.mxu1 %v683_v34  ;;  %v699_v56 = vpack.c.bf16 %v274_v55, %v273_v54  ;;  %v702_v59 = vpack.c.bf16 %v276_v58, %v275_v57  ;;  %v278_v61 = vld [vmem:[%s1111_s3 + $0x58] sm:$0xff]  ;;  %v279_v63 = vld [vmem:[%s1111_s3 + $0x60] sm:$0xff]  ;;  %v280_v0 = vld [vmem:[%s1111_s3 + $0x68] sm:$0xff] }
  0x20   :  { %686 = vmatprep.subr.bf16.mxu1 %v685_v38  ;;  %v705_v62 = vpack.c.bf16 %v278_v61, %v277_v60  ;;  %v708_v1 = vpack.c.bf16 %v280_v0, %v279_v63  ;;  %v281_v2 = vld [vmem:[%s1111_s3 + $0x70] sm:$0xff]  ;;  %v282_v3 = vld [vmem:[%s1111_s3 + $0x78] sm:$0xff]  ;;  %v471_v7 = vld [vmem:[%s1110_s2] ss:$0 sm:$0xff] }
  0x21   :  { %656 = vmatpush3.bf16.msra.mxu0 %v655_v42  ;;  %v711_v4 = vpack.c.bf16 %v282_v3, %v281_v2  ;;  %v366_v21 = vld [vmem:[%s1113_s5] sm:$0xff]  ;;  %v367_v22 = vld [vmem:[%s1113_s5 + $0x8] sm:$0xff]  ;;  %v368_v24 = vld [vmem:[%s1113_s5 + $0x10] sm:$0xff] }
  0x22   :  { %689 = vmatprep.subr.bf16.mxu0 %v764_v47  ;;  %v714_v23 = vpack.c.bf16 %v367_v22, %v366_v21  ;;  %v369_v25 = vld [vmem:[%s1113_s5 + $0x18] sm:$0xff]  ;;  %v371_v28 = vld [vmem:[%s1113_s5 + $0x28] sm:$0xff]  ;;  %v372_v30 = vld [vmem:[%s1113_s5 + $0x30] sm:$0xff] }
  0x23   :  { %688 = vmatpush3.bf16.msra.mxu1 %v687_v43  ;;  %v717_v26 = vpack.c.bf16 %v369_v25, %v368_v24  ;;  %v373_v31 = vld [vmem:[%s1113_s5 + $0x38] sm:$0xff]  ;;  %v473_v43 = vld [vmem:[%s1114_s6] ss:$0 sm:$0xff] }
  0x24   :  { %186 = vmatmul.mubr.f32.vlgmr.msra.gmra.mrb[0].mxu0 %v107_v27  ;;  %713 = vmatprep.subr.bf16.mxu1 %v764_v47  ;;  %v370_v27 = vld [vmem:[%s1113_s5 + $0x20] sm:$0xff]  ;;  %v723_v32 = vpack.c.bf16 %v373_v31, %v372_v30 }
  0x25   :  { %691 = vmatpush3.bf16.msra.mxu0 %v690_v46  ;;  %603 = vmatprep.mubr.msk.f32.mxu0 %vm765_vm0, %v766_v5  ;;  %v720_v29 = vpack.c.bf16 %v371_v28, %v370_v27 }
  0x26   :  { %256 = vmatmul.mubr.f32.vlgmr.msra.gmra.mrb[0].mxu1 %v114_v33  ;;  %692 = vmatprep.subr.bf16.mxu0 %v764_v47  ;;  %v472_v33 = vld [vmem:[%s1112_s4] ss:$0 sm:$0xff]  ;;  %s739_s4 = scalar_lea.vmem %s464_s17, 32 }
  0x27   :  { %622 = vmatprep.mubr.msk.f32.mxu1 %vm765_vm0, %v766_v5  ;;  %715 = vmatpush3.bf16.msra.mxu1 %v714_v23  ;;  %p740_p0 = scmp.ne.s32.totalorder %s464_s17, %s739_s4  ;;  %p745_p2 = scmp.lt.s32.totalorder %s739_s4, %s739_s4 }
  0x28   :  { %716 = vmatprep.subr.bf16.mxu1 %v764_v47 }
  0x29   :  { %694 = vmatpush3.bf16.msra.mxu0 %v693_v50  ;;  %p746_p3 = por %p745_p2, %p744_p1 }
  0x2a   :  { %695 = vmatprep.subr.bf16.mxu0 %v764_v47 }
  0x2b   :  { %718 = vmatpush3.bf16.msra.mxu1 %v717_v26  ;;  %p747_p4 = pnand %p746_p3, %p740_p0 }
  0x2c   :  { %719 = vmatprep.subr.bf16.mxu1 %v764_v47 }
  0x2d   :  { %697 = vmatpush3.bf16.msra.mxu0 %v696_v53 }
  0x2e   :  { %698 = vmatprep.subr.bf16.mxu0 %v764_v47 }
  0x2f   :  { %721 = vmatpush3.bf16.msra.mxu1 %v720_v29 }
  0x30   :  { %722 = vmatprep.subr.bf16.mxu1 %v764_v47 }
  0x31   :  { %700 = vmatpush3.bf16.msra.mxu0 %v699_v56 }
  0x32   :  { %701 = vmatprep.subr.bf16.mxu0 %v764_v47 }
  0x33   :  { %724 = vmatpush3.bf16.msra.mxu1 %v723_v32 }
  0x35   :  { %703 = vmatpush3.bf16.msra.mxu0 %v702_v59 }
  0x36   :  { %704 = vmatprep.subr.bf16.mxu0 %v764_v47 }
  0x39   :  { %706 = vmatpush3.bf16.msra.mxu0 %v705_v62 }
  0x3a   :  { %707 = vmatprep.subr.bf16.mxu0 %v764_v47 }
  0x3d   :  { %709 = vmatpush3.bf16.msra.mxu0 %v708_v1 }
  0x3e   :  { %710 = vmatprep.subr.bf16.mxu0 %v764_v47 }
  0x41   :  { %712 = vmatpush3.bf16.msra.mxu0 %v711_v4 }
  0xf7   :  { %v507_v6 = vpop.f32.mrb[0].mxu0 }
  0xf8   :  { %v508_v8 = vpop.f32.mrb[1].mxu0 }
  0xf9   :  { %v542_v9 = vpop.f32.mrb[0].mxu1  ;;  %v509_v10 = vadd.f32 %v508_v8, %v507_v6 }
  0xfa   :  { %v543_v11 = vpop.f32.mrb[1].mxu1 }
  0xfb   :  { %v544_v12 = vadd.f32 %v543_v11, %v542_v9  ;;  %v188_v13 = vadd.f32 %v509_v10, %v471_v7 }
  0xfd   :  { %v258_v14 = vadd.f32 %v544_v12, %v188_v13 }
  0xff   :  { %v261_v15 = vsub.f32 0.0, %v258_v14 }
 0x101   :  { %v262_v16 = vmul.f32 1.442695, %v261_v15 }
 0x103   :  { %731 = vpow2.f32 %v262_v16 }
 0x10d   :  { %v732_v17 = vpop.eup %731 }
 0x10e   :  { %v264_v18 = vadd.f32 1.0, %v732_v17 }
 0x110   :  { %733 = vrcp.f32 %v264_v18 }
 0x11a   :  { %v734_v19 = vpop.eup %733 }
 0x11b   :  { %v266_v20 = vmul.f32 %v734_v19, %v258_v14 }
 0x11d   :  { %604 = vmatmul.mubr.f32.vlgmr.msra.gmra.mrb[2].mxu0 %v266_v20 }
 0x1f0   :  { %v356_v34 = vpop.f32.mrb[2].mxu0 }
 0x1f1   :  { %v357_v35 = vadd.f32 %v472_v33, %v356_v34  ;;  %v605_v36 = vpop.f32.mrb[3].mxu0 }
 0x1f3   :  { %v360_v37 = vsub.f32 0.0, %v357_v35 }
 0x1f5   :  { %v361_v38 = vmul.f32 1.442695, %v360_v37 }
 0x1f7   :  { %735 = vpow2.f32 %v361_v38 }
 0x201   :  { %v736_v39 = vpop.eup %735 }
 0x202   :  { %v363_v40 = vadd.f32 1.0, %v736_v39 }
 0x204   :  { %737 = vrcp.f32 %v363_v40 }
 0x20e   :  { %v738_v41 = vpop.eup %737 }
 0x20f   :  { %v365_v42 = vmul.f32 %v738_v41, %v357_v35 }
 0x211   :  { %623 = vmatmul.mubr.msk.f32.vlgmr.msra.gmra.mrb[2].mxu1 %vm381_vm1, %v365_v42 }
 0x2e4   :  { %v451_v44 = vpop.f32.mrb[2].mxu1 }
 0x2e5   :  { %v452_v45 = vadd.f32 %v473_v43, %v451_v44  ;;  %v624_v46 = vpop.f32.mrb[3].mxu1 }
 0x2e7   :  { %456 = vst.msk [vmem:[#allocation2] sm:$0x3] %vm455_vm2, %v452_v45 }
 0x2e8   :  { %750 = shalt.err (!%p747_p4)
}
 0x2e9   :  { %s751_s19 = scalar_lea.hbm %s1115_s7, 32 }
 0x2ea   :  { %p752_p5 = scmp.ne.s32.totalorder %s1115_s7, %s751_s19  ;;  %p755_p6 = scmp.lt.u32.totalorder %s751_s19, %s1115_s7 }
 0x2ec   :  { %p757_p7 = pnand %p755_p6, %p752_p5 }
 0x2ee   :  { %760 = shalt.err (!%p757_p7)
}
 0x2ef   :  { %466 = dma.vmem_to_hbm [thread:$0]  %s464_s17, 32, %s1115_s7, [#allocation3]  }
 0x2f0   :  { %761 = dma.done.wait [#allocation3], 32  }
 0x2f1   :  { %762 = vsyncadd [#allocation3], 4294967264 }
 0x2f2   :  { %470 = vsyncpa [#allocation3], 1 }

</bundles_post_ra>
